<compile_context>
chip_gen: v7x
topology: tpu7x:2x2x1
jax: 0.10.0
libtpu: 0.0.40
codegen_flags: <defaults>
</compile_context>

<pallas_src>
import functools
from typing import NamedTuple

import jax
import jax.numpy as jnp
import numpy as np
from jax import lax
from jax.experimental import pallas as pl
from jax.experimental.pallas import tpu as pltpu


# ----------------------------- glue: f0 -> coarse bins -----------------------
F0_BIN = 256
F0_MIN = 50.0
F0_MAX = 1100.0
_F0_MEL_MIN = 1127.0 * float(np.log(1.0 + F0_MIN / 700.0))
_F0_MEL_MAX = 1127.0 * float(np.log(1.0 + F0_MAX / 700.0))


def f0_to_coarse(f0):
    f0_mel = 1127.0 * jnp.log(1.0 + f0 / 700.0)
    f0_mel = jnp.where(
        f0_mel > 0.0,
        (f0_mel - _F0_MEL_MIN) * (F0_BIN - 2) / (_F0_MEL_MAX - _F0_MEL_MIN) + 1.0,
        f0_mel,
    )
    f0_mel = jnp.where(f0_mel <= 1.0, 1.0, f0_mel)
    f0_mel = jnp.where(f0_mel > F0_BIN - 1, float(F0_BIN - 1), f0_mel)
    # torch: (f0_mel + 0.5).long(); values are positive so truncation == round.
    return (f0_mel + 0.5).astype(jnp.int32)


class F0EncoderConfig(NamedTuple):
    inp_size: int
    hidden_size: int
    n_layers: int
    kernel_size: int
    gn_chs_grp: int      # channels per GroupNorm group (hparams['gn_chs_grp'])
    c_pad: int           # lane-dense channel padding (multiple of 128)


# ----------------------------- fused Pallas kernel ---------------------------
def _f0_conv_stack_kernel(x_ref, w_ref, b_ref, gamma_ref, beta_ref, gavg_ref,
                          o_ref, act_ref, *, n_layers, kernel_size,
                          matmul_dtype):
    """One batch element, whole conv stack, activation resident in VMEM.

    x_ref:     (1, T, C_pad)        embedded f0 (channels-last, channel-padded)
    w_ref:     (L, K*C_pad, C_pad)  im2col conv weights (matmul dtype)
    b_ref:     (L, 1, C_pad)        conv bias (f32, padded channels zero)
    gamma_ref: (L, 1, C_pad)        GroupNorm weight (f32, padded zero)
    beta_ref:  (L, 1, C_pad)        GroupNorm bias (f32, padded zero)
    gavg_ref:  (C_pad, C_pad)       block-diag group-averaging matrix (f32)
    o_ref:     (1, T, C_pad)
    act_ref:   VMEM (T + K - 1, C_pad) f32 scratch: halo-padded activation
    """
    K = kernel_size
    pad = (K - 1) // 2
    T = o_ref.shape[1]
    inv_t = 1.0 / float(T)

    # Conv zero padding lives in the scratch halo rows: zero once, then the
    # interior rows are (re)written every layer.
    act_ref[...] = jnp.zeros_like(act_ref)
    act_ref[pad:pad + T, :] = x_ref[0]

    for layer in range(n_layers):
        # --- Conv1d(k, stride=1, pad=(k-1)//2) as one im2col MXU matmul -----
        xp = act_ref[...]                                   # (T + K - 1, C_pad)
        cols = [xp[k:k + T, :] for k in range(K)]           # K shifted views
        xcat = jnp.concatenate(cols, axis=-1).astype(matmul_dtype)  # (T, K*C)
        acc = jnp.dot(xcat, w_ref[layer],
                      preferred_element_type=jnp.float32)   # (T, C_pad) f32
        acc = acc + b_ref[layer]                             # (1, C_pad) bcast

        # --- GroupNorm: two-pass stats (mean, then centered variance) -------
        sum_c = jnp.sum(acc, axis=0, keepdims=True)          # (1, C_pad)
        mean_c = jnp.dot(sum_c, gavg_ref[...],
                         preferred_element_type=jnp.float32) * inv_t
        xc = acc - mean_c
        ssq_c = jnp.sum(xc * xc, axis=0, keepdims=True)      # (1, C_pad)
        var_c = jnp.dot(ssq_c, gavg_ref[...],
                        preferred_element_type=jnp.float32) * inv_t
        scale_c = gamma_ref[layer] * lax.rsqrt(var_c + 1e-5)

        # --- normalize + affine + ReLU in one VPU pass -----------------------
        y = jnp.maximum(xc * scale_c + beta_ref[layer], 0.0)

        if layer + 1 < n_layers:
            act_ref[pad:pad + T, :] = y                      # stays in VMEM
        else:
            o_ref[0, :, :] = y


def f0_conv_stack(x_emb, w_packed, b_packed, gamma_packed, beta_packed, gavg,
                  config, matmul_dtype):
    """x_emb: (B, T, c_pad) f32. Returns (B, T, c_pad) f32."""
    B, T, c_pad = x_emb.shape
    L = config.n_layers
    K = config.kernel_size
    pad = (K - 1) // 2
    w_kc = K * c_pad
    itemsize = 2 if matmul_dtype == jnp.bfloat16 else 4

    kernel = functools.partial(
        _f0_conv_stack_kernel,
        n_layers=L, kernel_size=K, matmul_dtype=matmul_dtype)

    # Advisory cost estimate so XLA schedules the surrounding gather sensibly.
    cost = pl.CostEstimate(
        flops=2 * B * T * w_kc * c_pad * L + 8 * B * T * c_pad * L,
        transcendentals=B * L * c_pad,
        bytes_accessed=(2 * B * T * c_pad * 4              # activation in+out
                        + L * w_kc * c_pad * itemsize      # conv weights
                        + (3 * L + c_pad) * c_pad * 4))    # bias/gn/gavg

    # VMEM budget: double-buffered in/out tiles + weights + scratch, with
    # headroom, kept well under v7x's 64 MiB physical VMEM.
    vmem_est = (2 * 2 * T * c_pad * 4
                + 2 * L * w_kc * c_pad * itemsize
                + 2 * (3 * L + c_pad) * c_pad * 4
                + (T + 2 * pad) * c_pad * 4)
    vmem_limit = int(min(max(2 * vmem_est, 32 * 2 ** 20), 48 * 2 ** 20))

    return pl.pallas_call(
        kernel,
        out_shape=jax.ShapeDtypeStruct((B, T, c_pad), jnp.float32),
        grid=(B,),
        in_specs=[
            pl.BlockSpec((1, T, c_pad), lambda i: (i, 0, 0)),
            pl.BlockSpec((L, w_kc, c_pad), lambda i: (0, 0, 0)),
            pl.BlockSpec((L, 1, c_pad), lambda i: (0, 0, 0)),
            pl.BlockSpec((L, 1, c_pad), lambda i: (0, 0, 0)),
            pl.BlockSpec((L, 1, c_pad), lambda i: (0, 0, 0)),
            pl.BlockSpec((c_pad, c_pad), lambda i: (0, 0)),
        ],
        out_specs=pl.BlockSpec((1, T, c_pad), lambda i: (i, 0, 0)),
        scratch_shapes=[pltpu.VMEM((T + 2 * pad, c_pad), jnp.float32)],
        compiler_params=pltpu.CompilerParams(
            dimension_semantics=("parallel",),
            vmem_limit_bytes=vmem_limit),
        cost_estimate=cost,
    )(x_emb, w_packed.astype(matmul_dtype), b_packed, gamma_packed,
      beta_packed, gavg)


# ----------------------------- params & packing ------------------------------
def init_f0_encoder_params(key, config):
    inp, hid = config.inp_size, config.hidden_size
    L, K = config.n_layers, config.kernel_size
    keys = jax.random.split(key, 1 + 2 * L)
    # Embedding(300, inp_size); padding_idx=0 row zeroed (diffvae's Embedding).
    emb = jax.random.normal(keys[0], (300, inp), jnp.float32) * (inp ** -0.5)
    emb = emb.at[0].set(0.0)
    convs = []
    for i in range(L):
        c_in = inp if i == 0 else hid
        fan_in = c_in * K
        w = jax.random.normal(keys[1 + 2 * i], (K, c_in, hid),
                              jnp.float32) * (fan_in ** -0.5)
        b = jax.random.normal(keys[2 + 2 * i], (hid,), jnp.float32) * 0.01
        convs.append({"w": w, "b": b,
                      "gamma": jnp.ones((hid,), jnp.float32),
                      "beta": jnp.zeros((hid,), jnp.float32)})
    return {"emb": emb, "convs": convs}


def pack_f0_encoder_params(params, config):
    """Pad channels to lane-dense width + stack layers for the fused kernel.

    Padded channels are exactly zero everywhere (weights, bias, gamma, beta,
    group membership), so they stay zero through every layer and never affect
    the real channels.
    """
    hid, L, K = config.hidden_size, config.n_layers, config.kernel_size
    cp, cg = config.c_pad, config.gn_chs_grp

    # Channel-padded embedding table -> the gather already yields (B,T,c_pad),
    # so no extra HBM pad pass on the activation.
    emb = jnp.zeros((params["emb"].shape[0], cp), jnp.float32)
    emb = emb.at[:, :config.inp_size].set(params["emb"])

    w_list, b_list, g_list, bt_list = [], [], [], []
    for layer in params["convs"]:
        K_, c_in, c_out = layer["w"].shape
        wp = jnp.zeros((K_, cp, cp), jnp.float32)
        wp = wp.at[:, :c_in, :c_out].set(layer["w"])
        w_list.append(wp.reshape(K_ * cp, cp))               # im2col layout
        b_list.append(jnp.zeros((cp,), jnp.float32).at[:c_out].set(layer["b"]))
        g_list.append(jnp.zeros((cp,), jnp.float32).at[:c_out].set(layer["gamma"]))
        bt_list.append(jnp.zeros((cp,), jnp.float32).at[:c_out].set(layer["beta"]))

    w_packed = jnp.stack(w_list)                              # (L, K*cp, cp)
    b_packed = jnp.stack(b_list)[:, None, :]                  # (L, 1, cp)
    gamma_packed = jnp.stack(g_list)[:, None, :]
    beta_packed = jnp.stack(bt_list)[:, None, :]

    # Block-diagonal group-averaging matrix: gavg[c, c'] = 1/cg when c and c'
    # are real channels in the same contiguous GroupNorm group, else 0.
    ch = np.arange(cp)
    same = (((ch[:, None] // cg) == (ch[None, :] // cg))
            & (ch[:, None] < hid) & (ch[None, :] < hid))
    gavg = jnp.asarray(same, jnp.float32) / float(cg)

    return {"emb": emb, "w": w_packed, "b": b_packed,
            "gamma": gamma_packed, "beta": beta_packed, "gavg": gavg}


# ----------------------------- forward ---------------------------------------
@functools.partial(jax.jit, static_argnames=("config", "matmul_dtype"))
def f0_encoder_forward(f0, packed, config, matmul_dtype="float32"):
    mm_dtype = {"float32": jnp.float32, "bfloat16": jnp.bfloat16}[matmul_dtype]
    idx = f0_to_coarse(f0)                                # (B, T) int32
    x = jnp.take(packed["emb"], idx, axis=0)              # (B, T, c_pad)
    y = f0_conv_stack(x, packed["w"], packed["b"], packed["gamma"],
                      packed["beta"], packed["gavg"], config, mm_dtype)
    return y[..., :config.hidden_size]                    # (B, T, hidden)


# ----------------------------- pure-JAX reference ----------------------------
def _reference_forward(f0, params, config):
    idx = f0_to_coarse(f0)
    x = jnp.take(params["emb"], idx, axis=0)              # (B, T, C)
    ng = config.hidden_size // config.gn_chs_grp
    for layer in params["convs"]:
        w = layer["w"]                                    # (K, Cin, Cout)
        x_ncl = jnp.transpose(x, (0, 2, 1))
        w_oik = jnp.transpose(w, (2, 1, 0))               # (Cout, Cin, K)
        y = lax.conv_general_dilated(
            x_ncl, w_oik, window_strides=(1,),
            padding=[((w.shape[0] - 1) // 2,) * 2],
            dimension_numbers=("NCH", "OIH", "NCH"),
            precision=lax.Precision.HIGHEST)
        y = y + layer["b"][None, :, None]
        B, C, T = y.shape
        yg = y.reshape(B, ng, C // ng, T)
        mean = jnp.mean(yg, axis=(2, 3), keepdims=True)
        var = jnp.mean((yg - mean) ** 2, axis=(2, 3), keepdims=True)
        yg = (yg - mean) / jnp.sqrt(var + 1e-5)
        y = yg.reshape(B, C, T)
        y = y * layer["gamma"][None, :, None] + layer["beta"][None, :, None]
        x = jnp.transpose(jnp.maximum(y, 0.0), (0, 2, 1))
    return x


# ----------------------------------- main -------------------------------------
if __name__ == "__main__":
    B, T = 2, 16
    inp_size, hidden_size = 32, 32
    n_layers, kernel_size, gn_chs_grp = 2, 5, 4
    c_pad = 128 * ((max(inp_size, hidden_size) + 127) // 128)

    config = F0EncoderConfig(inp_size=inp_size, hidden_size=hidden_size,
                             n_layers=n_layers, kernel_size=kernel_size,
                             gn_chs_grp=gn_chs_grp, c_pad=c_pad)

    key = jax.random.PRNGKey(0)
    k_par, k_f0, k_uv = jax.random.split(key, 3)

    params = init_f0_encoder_params(k_par, config)
    packed = pack_f0_encoder_params(params, config)

    # f0 contour in Hz with some unvoiced (zero) frames.
    f0 = jax.random.uniform(k_f0, (B, T), minval=60.0, maxval=600.0)
    f0 = f0 * (jax.random.uniform(k_uv, (B, T)) > 0.2).astype(jnp.float32)

    ref = jax.block_until_ready(_reference_forward(f0, params, config))

    # f32 MXU path (tolerance covers MXU multi-pass f32 matmul behavior).
    out = jax.block_until_ready(
        f0_encoder_forward(f0, packed, config, matmul_dtype="float32"))
    assert out.shape == (B, T, hidden_size), out.shape
    err32 = float(jnp.max(jnp.abs(out - ref)))
    assert jnp.allclose(out, ref, atol=1e-2, rtol=1e-2), err32

    # bf16 MXU-input path (f32 accumulation + f32 GroupNorm stats).
    out_bf16 = jax.block_until_ready(
        f0_encoder_forward(f0, packed, config, matmul_dtype="bfloat16"))
    errbf = float(jnp.max(jnp.abs(out_bf16 - ref)))
    assert jnp.allclose(out_bf16, ref, atol=5e-2, rtol=5e-2), errbf

    print("KERNEL_OK")
</pallas_src>

<mosaic_0001>
module attributes {stable_mosaic.version = 11 : i64} {
  func.func @_f0_conv_stack_kernel(%arg0: i32, %arg1: memref<1x16x128xf32, #tpu.memory_space<vmem>>, %arg2: memref<2x640x128xf32, #tpu.memory_space<vmem>>, %arg3: memref<2x1x128xf32, #tpu.memory_space<vmem>>, %arg4: memref<2x1x128xf32, #tpu.memory_space<vmem>>, %arg5: memref<2x1x128xf32, #tpu.memory_space<vmem>>, %arg6: memref<128x128xf32, #tpu.memory_space<vmem>>, %arg7: memref<1x16x128xf32, #tpu.memory_space<vmem>>, %arg8: memref<20x128xf32, #tpu.memory_space<vmem>>) attributes {dimension_semantics = [#tpu.dimension_semantics<parallel>], iteration_bounds = array<i64: 2>, scalar_prefetch = 0 : i64, scratch_operands = 1 : i64, tpu.core_type = #tpu.core_type<tc>, window_params = [{transform_indices = @transform_0, window_bounds = array<i64: 1, 16, 128>}, {pipeline_mode = #tpu.pipeline_mode<synchronous>, transform_indices = @transform_1, window_bounds = array<i64: 2, 640, 128>}, {pipeline_mode = #tpu.pipeline_mode<synchronous>, transform_indices = @transform_2, window_bounds = array<i64: 2, 1, 128>}, {pipeline_mode = #tpu.pipeline_mode<synchronous>, transform_indices = @transform_3, window_bounds = array<i64: 2, 1, 128>}, {pipeline_mode = #tpu.pipeline_mode<synchronous>, transform_indices = @transform_4, window_bounds = array<i64: 2, 1, 128>}, {pipeline_mode = #tpu.pipeline_mode<synchronous>, transform_indices = @transform_5, window_bounds = array<i64: 128, 128>}, {transform_indices = @transform_6, window_bounds = array<i64: 1, 16, 128>}]} {
    %cst = arith.constant 0.000000e+00 : f32
    %0 = vector.broadcast %cst : f32 to vector<20x128xf32>
    %c0 = arith.constant 0 : index
    %c0_0 = arith.constant 0 : index
    %1 = vector.load %arg8[%c0, %c0_0] : memref<20x128xf32, #tpu.memory_space<vmem>>, vector<20x128xf32>
    tpu.vector_store %arg8[%c0, %c0_0], %0 {strides = array<i32>} : memref<20x128xf32, #tpu.memory_space<vmem>>, vector<20x128xf32>,
    %c0_1 = arith.constant 0 : index
    %c0_2 = arith.constant 0 : index
    %c0_3 = arith.constant 0 : index
    %2 = vector.load %arg1[%c0_1, %c0_2, %c0_3] : memref<1x16x128xf32, #tpu.memory_space<vmem>>, vector<1x16x128xf32>
    %3 = vector.shape_cast %2 : vector<1x16x128xf32> to vector<16x128xf32>
    %c2 = arith.constant 2 : index
    %c0_4 = arith.constant 0 : index
    %4 = vector.load %arg8[%c2, %c0_4] : memref<20x128xf32, #tpu.memory_space<vmem>>, vector<16x128xf32>
    tpu.vector_store %arg8[%c2, %c0_4], %3 {strides = array<i32>} : memref<20x128xf32, #tpu.memory_space<vmem>>, vector<16x128xf32>,
    %c0_5 = arith.constant 0 : index
    %c0_6 = arith.constant 0 : index
    %5 = vector.load %arg8[%c0_5, %c0_6] : memref<20x128xf32, #tpu.memory_space<vmem>>, vector<20x128xf32>
    %6 = vector.extract_strided_slice %5 {offsets = [0, 0], sizes = [16, 128], strides = [1, 1]} : vector<20x128xf32> to vector<16x128xf32>
    %7 = vector.extract_strided_slice %5 {offsets = [1, 0], sizes = [16, 128], strides = [1, 1]} : vector<20x128xf32> to vector<16x128xf32>
    %8 = vector.extract_strided_slice %5 {offsets = [2, 0], sizes = [16, 128], strides = [1, 1]} : vector<20x128xf32> to vector<16x128xf32>
    %9 = vector.extract_strided_slice %5 {offsets = [3, 0], sizes = [16, 128], strides = [1, 1]} : vector<20x128xf32> to vector<16x128xf32>
    %10 = vector.extract_strided_slice %5 {offsets = [4, 0], sizes = [16, 128], strides = [1, 1]} : vector<20x128xf32> to vector<16x128xf32>
    %11 = tpu.concatenate %6, %7, %8, %9, %10 in 1 : vector<16x128xf32>, vector<16x128xf32>, vector<16x128xf32>, vector<16x128xf32>, vector<16x128xf32> -> vector<16x640xf32>
    %c0_7 = arith.constant 0 : index
    %c0_8 = arith.constant 0 : index
    %c0_9 = arith.constant 0 : index
    %12 = vector.load %arg2[%c0_7, %c0_8, %c0_9] : memref<2x640x128xf32, #tpu.memory_space<vmem>>, vector<1x640x128xf32>
    %13 = vector.shape_cast %12 : vector<1x640x128xf32> to vector<640x128xf32>
    %cst_10 = arith.constant dense<0.000000e+00> : vector<16x128xf32>
    %14 = tpu.matmul %11, %13, %cst_10 {dimension_numbers = #tpu.dot_dimension_numbers<[1], [0], [0], [1], [0, 0, 1, 1], [], []>} : vector<16x640xf32>, vector<640x128xf32>, vector<16x128xf32> -> vector<16x128xf32>
    %c0_11 = arith.constant 0 : index
    %c0_12 = arith.constant 0 : index
    %c0_13 = arith.constant 0 : index
    %15 = vector.load %arg3[%c0_11, %c0_12, %c0_13] : memref<2x1x128xf32, #tpu.memory_space<vmem>>, vector<1x1x128xf32>
    %16 = vector.shape_cast %15 : vector<1x1x128xf32> to vector<1x128xf32>
    %17 = vector.broadcast %16 : vector<1x128xf32> to vector<16x128xf32>
    %18 = arith.addf %14, %17 : vector<16x128xf32>
    %cst_14 = arith.constant dense<0.000000e+00> : vector<128xf32>
    %19 = vector.multi_reduction <add>, %18, %cst_14 [0] : vector<16x128xf32> to vector<128xf32>
    %20 = vector.shape_cast %19 : vector<128xf32> to vector<1x128xf32>
    %c0_15 = arith.constant 0 : index
    %c0_16 = arith.constant 0 : index
    %21 = vector.load %arg6[%c0_15, %c0_16] : memref<128x128xf32, #tpu.memory_space<vmem>>, vector<128x128xf32>
    %cst_17 = arith.constant dense<0.000000e+00> : vector<1x128xf32>
    %22 = tpu.matmul %20, %21, %cst_17 {dimension_numbers = #tpu.dot_dimension_numbers<[1], [0], [0], [1], [0, 0, 1, 1], [], []>} : vector<1x128xf32>, vector<128x128xf32>, vector<1x128xf32> -> vector<1x128xf32>
    %cst_18 = arith.constant 6.250000e-02 : f32
    %23 = vector.broadcast %cst_18 : f32 to vector<1x128xf32>
    %24 = arith.mulf %22, %23 : vector<1x128xf32>
    %25 = vector.broadcast %24 : vector<1x128xf32> to vector<16x128xf32>
    %26 = arith.subf %18, %25 : vector<16x128xf32>
    %27 = arith.mulf %26, %26 : vector<16x128xf32>
    %cst_19 = arith.constant dense<0.000000e+00> : vector<128xf32>
    %28 = vector.multi_reduction <add>, %27, %cst_19 [0] : vector<16x128xf32> to vector<128xf32>
    %29 = vector.shape_cast %28 : vector<128xf32> to vector<1x128xf32>
    %c0_20 = arith.constant 0 : index
    %c0_21 = arith.constant 0 : index
    %30 = vector.load %arg6[%c0_20, %c0_21] : memref<128x128xf32, #tpu.memory_space<vmem>>, vector<128x128xf32>
    %cst_22 = arith.constant dense<0.000000e+00> : vector<1x128xf32>
    %31 = tpu.matmul %29, %30, %cst_22 {dimension_numbers = #tpu.dot_dimension_numbers<[1], [0], [0], [1], [0, 0, 1, 1], [], []>} : vector<1x128xf32>, vector<128x128xf32>, vector<1x128xf32> -> vector<1x128xf32>
    %cst_23 = arith.constant 6.250000e-02 : f32
    %32 = vector.broadcast %cst_23 : f32 to vector<1x128xf32>
    %33 = arith.mulf %31, %32 : vector<1x128xf32>
    %c0_24 = arith.constant 0 : index
    %c0_25 = arith.constant 0 : index
    %c0_26 = arith.constant 0 : index
    %34 = vector.load %arg4[%c0_24, %c0_25, %c0_26] : memref<2x1x128xf32, #tpu.memory_space<vmem>>, vector<1x1x128xf32>
    %35 = vector.shape_cast %34 : vector<1x1x128xf32> to vector<1x128xf32>
    %cst_27 = arith.constant 9.99999974E-6 : f32
    %36 = vector.broadcast %cst_27 : f32 to vector<1x128xf32>
    %37 = arith.addf %33, %36 : vector<1x128xf32>
    %38 = math.rsqrt %37 : vector<1x128xf32>
    %39 = arith.mulf %35, %38 : vector<1x128xf32>
    %40 = vector.broadcast %39 : vector<1x128xf32> to vector<16x128xf32>
    %41 = arith.mulf %26, %40 : vector<16x128xf32>
    %c0_28 = arith.constant 0 : index
    %c0_29 = arith.constant 0 : index
    %c0_30 = arith.constant 0 : index
    %42 = vector.load %arg5[%c0_28, %c0_29, %c0_30] : memref<2x1x128xf32, #tpu.memory_space<vmem>>, vector<1x1x128xf32>
    %43 = vector.shape_cast %42 : vector<1x1x128xf32> to vector<1x128xf32>
    %44 = vector.broadcast %43 : vector<1x128xf32> to vector<16x128xf32>
    %45 = arith.addf %41, %44 : vector<16x128xf32>
    %cst_31 = arith.constant 0.000000e+00 : f32
    %46 = vector.broadcast %cst_31 : f32 to vector<16x128xf32>
    %47 = arith.maximumf %45, %46 : vector<16x128xf32>
    %c2_32 = arith.constant 2 : index
    %c0_33 = arith.constant 0 : index
    %48 = vector.load %arg8[%c2_32, %c0_33] : memref<20x128xf32, #tpu.memory_space<vmem>>, vector<16x128xf32>
    tpu.vector_store %arg8[%c2_32, %c0_33], %47 {strides = array<i32>} : memref<20x128xf32, #tpu.memory_space<vmem>>, vector<16x128xf32>,
    %c0_34 = arith.constant 0 : index
    %c0_35 = arith.constant 0 : index
    %49 = vector.load %arg8[%c0_34, %c0_35] : memref<20x128xf32, #tpu.memory_space<vmem>>, vector<20x128xf32>
    %50 = vector.extract_strided_slice %49 {offsets = [0, 0], sizes = [16, 128], strides = [1, 1]} : vector<20x128xf32> to vector<16x128xf32>
    %51 = vector.extract_strided_slice %49 {offsets = [1, 0], sizes = [16, 128], strides = [1, 1]} : vector<20x128xf32> to vector<16x128xf32>
    %52 = vector.extract_strided_slice %49 {offsets = [2, 0], sizes = [16, 128], strides = [1, 1]} : vector<20x128xf32> to vector<16x128xf32>
    %53 = vector.extract_strided_slice %49 {offsets = [3, 0], sizes = [16, 128], strides = [1, 1]} : vector<20x128xf32> to vector<16x128xf32>
    %54 = vector.extract_strided_slice %49 {offsets = [4, 0], sizes = [16, 128], strides = [1, 1]} : vector<20x128xf32> to vector<16x128xf32>
    %55 = tpu.concatenate %50, %51, %52, %53, %54 in 1 : vector<16x128xf32>, vector<16x128xf32>, vector<16x128xf32>, vector<16x128xf32>, vector<16x128xf32> -> vector<16x640xf32>
    %c1 = arith.constant 1 : index
    %c0_36 = arith.constant 0 : index
    %c0_37 = arith.constant 0 : index
    %56 = vector.load %arg2[%c1, %c0_36, %c0_37] : memref<2x640x128xf32, #tpu.memory_space<vmem>>, vector<1x640x128xf32>
    %57 = vector.shape_cast %56 : vector<1x640x128xf32> to vector<640x128xf32>
    %cst_38 = arith.constant dense<0.000000e+00> : vector<16x128xf32>
    %58 = tpu.matmul %55, %57, %cst_38 {dimension_numbers = #tpu.dot_dimension_numbers<[1], [0], [0], [1], [0, 0, 1, 1], [], []>} : vector<16x640xf32>, vector<640x128xf32>, vector<16x128xf32> -> vector<16x128xf32>
    %c1_39 = arith.constant 1 : index
    %c0_40 = arith.constant 0 : index
    %c0_41 = arith.constant 0 : index
    %59 = vector.load %arg3[%c1_39, %c0_40, %c0_41] : memref<2x1x128xf32, #tpu.memory_space<vmem>>, vector<1x1x128xf32>
    %60 = vector.shape_cast %59 : vector<1x1x128xf32> to vector<1x128xf32>
    %61 = vector.broadcast %60 : vector<1x128xf32> to vector<16x128xf32>
    %62 = arith.addf %58, %61 : vector<16x128xf32>
    %cst_42 = arith.constant dense<0.000000e+00> : vector<128xf32>
    %63 = vector.multi_reduction <add>, %62, %cst_42 [0] : vector<16x128xf32> to vector<128xf32>
    %64 = vector.shape_cast %63 : vector<128xf32> to vector<1x128xf32>
    %c0_43 = arith.constant 0 : index
    %c0_44 = arith.constant 0 : index
    %65 = vector.load %arg6[%c0_43, %c0_44] : memref<128x128xf32, #tpu.memory_space<vmem>>, vector<128x128xf32>
    %cst_45 = arith.constant dense<0.000000e+00> : vector<1x128xf32>
    %66 = tpu.matmul %64, %65, %cst_45 {dimension_numbers = #tpu.dot_dimension_numbers<[1], [0], [0], [1], [0, 0, 1, 1], [], []>} : vector<1x128xf32>, vector<128x128xf32>, vector<1x128xf32> -> vector<1x128xf32>
    %cst_46 = arith.constant 6.250000e-02 : f32
    %67 = vector.broadcast %cst_46 : f32 to vector<1x128xf32>
    %68 = arith.mulf %66, %67 : vector<1x128xf32>
    %69 = vector.broadcast %68 : vector<1x128xf32> to vector<16x128xf32>
    %70 = arith.subf %62, %69 : vector<16x128xf32>
    %71 = arith.mulf %70, %70 : vector<16x128xf32>
    %cst_47 = arith.constant dense<0.000000e+00> : vector<128xf32>
    %72 = vector.multi_reduction <add>, %71, %cst_47 [0] : vector<16x128xf32> to vector<128xf32>
    %73 = vector.shape_cast %72 : vector<128xf32> to vector<1x128xf32>
    %c0_48 = arith.constant 0 : index
    %c0_49 = arith.constant 0 : index
    %74 = vector.load %arg6[%c0_48, %c0_49] : memref<128x128xf32, #tpu.memory_space<vmem>>, vector<128x128xf32>
    %cst_50 = arith.constant dense<0.000000e+00> : vector<1x128xf32>
    %75 = tpu.matmul %73, %74, %cst_50 {dimension_numbers = #tpu.dot_dimension_numbers<[1], [0], [0], [1], [0, 0, 1, 1], [], []>} : vector<1x128xf32>, vector<128x128xf32>, vector<1x128xf32> -> vector<1x128xf32>
    %cst_51 = arith.constant 6.250000e-02 : f32
    %76 = vector.broadcast %cst_51 : f32 to vector<1x128xf32>
    %77 = arith.mulf %75, %76 : vector<1x128xf32>
    %c1_52 = arith.constant 1 : index
    %c0_53 = arith.constant 0 : index
    %c0_54 = arith.constant 0 : index
    %78 = vector.load %arg4[%c1_52, %c0_53, %c0_54] : memref<2x1x128xf32, #tpu.memory_space<vmem>>, vector<1x1x128xf32>
    %79 = vector.shape_cast %78 : vector<1x1x128xf32> to vector<1x128xf32>
    %cst_55 = arith.constant 9.99999974E-6 : f32
    %80 = vector.broadcast %cst_55 : f32 to vector<1x128xf32>
    %81 = arith.addf %77, %80 : vector<1x128xf32>
    %82 = math.rsqrt %81 : vector<1x128xf32>
    %83 = arith.mulf %79, %82 : vector<1x128xf32>
    %84 = vector.broadcast %83 : vector<1x128xf32> to vector<16x128xf32>
    %85 = arith.mulf %70, %84 : vector<16x128xf32>
    %c1_56 = arith.constant 1 : index
    %c0_57 = arith.constant 0 : index
    %c0_58 = arith.constant 0 : index
    %86 = vector.load %arg5[%c1_56, %c0_57, %c0_58] : memref<2x1x128xf32, #tpu.memory_space<vmem>>, vector<1x1x128xf32>
    %87 = vector.shape_cast %86 : vector<1x1x128xf32> to vector<1x128xf32>
    %88 = vector.broadcast %87 : vector<1x128xf32> to vector<16x128xf32>
    %89 = arith.addf %85, %88 : vector<16x128xf32>
    %cst_59 = arith.constant 0.000000e+00 : f32
    %90 = vector.broadcast %cst_59 : f32 to vector<16x128xf32>
    %91 = arith.maximumf %89, %90 : vector<16x128xf32>
    %c0_60 = arith.constant 0 : index
    %c0_61 = arith.constant 0 : index
    %c0_62 = arith.constant 0 : index
    %92 = vector.load %arg7[%c0_60, %c0_61, %c0_62] : memref<1x16x128xf32, #tpu.memory_space<vmem>>, vector<1x16x128xf32>
    %93 = vector.shape_cast %92 : vector<1x16x128xf32> to vector<16x128xf32>
    %94 = vector.shape_cast %91 : vector<16x128xf32> to vector<1x16x128xf32>
    tpu.vector_store %arg7[%c0_60, %c0_61, %c0_62], %94 {strides = array<i32>} : memref<1x16x128xf32, #tpu.memory_space<vmem>>, vector<1x16x128xf32>,
    return
  }
  func.func @transform_0(%arg0: i32) -> (i32, i32, i32) {
    %c0_i32 = arith.constant 0 : i32
    %c0_i32_0 = arith.constant 0 : i32
    %c0_i32_1 = arith.constant 0 : i32
    return %arg0, %c0_i32, %c0_i32_0 : i32, i32, i32
  }
  func.func @transform_1(%arg0: i32) -> (i32, i32, i32) {
    %c0_i32 = arith.constant 0 : i32
    %c0_i32_0 = arith.constant 0 : i32
    %c0_i32_1 = arith.constant 0 : i32
    %c0_i32_2 = arith.constant 0 : i32
    return %c0_i32, %c0_i32_0, %c0_i32_1 : i32, i32, i32
  }
  func.func @transform_2(%arg0: i32) -> (i32, i32, i32) {
    %c0_i32 = arith.constant 0 : i32
    %c0_i32_0 = arith.constant 0 : i32
    %c0_i32_1 = arith.constant 0 : i32
    %c0_i32_2 = arith.constant 0 : i32
    return %c0_i32, %c0_i32_0, %c0_i32_1 : i32, i32, i32
  }
  func.func @transform_3(%arg0: i32) -> (i32, i32, i32) {
    %c0_i32 = arith.constant 0 : i32
    %c0_i32_0 = arith.constant 0 : i32
    %c0_i32_1 = arith.constant 0 : i32
    %c0_i32_2 = arith.constant 0 : i32
    return %c0_i32, %c0_i32_0, %c0_i32_1 : i32, i32, i32
  }
  func.func @transform_4(%arg0: i32) -> (i32, i32, i32) {
    %c0_i32 = arith.constant 0 : i32
    %c0_i32_0 = arith.constant 0 : i32
    %c0_i32_1 = arith.constant 0 : i32
    %c0_i32_2 = arith.constant 0 : i32
    return %c0_i32, %c0_i32_0, %c0_i32_1 : i32, i32, i32
  }
  func.func @transform_5(%arg0: i32) -> (i32, i32) {
    %c0_i32 = arith.constant 0 : i32
    %c0_i32_0 = arith.constant 0 : i32
    %c0_i32_1 = arith.constant 0 : i32
    return %c0_i32, %c0_i32_0 : i32, i32
  }
  func.func @transform_6(%arg0: i32) -> (i32, i32, i32) {
    %c0_i32 = arith.constant 0 : i32
    %c0_i32_0 = arith.constant 0 : i32
    %c0_i32_1 = arith.constant 0 : i32
    return %arg0, %c0_i32, %c0_i32_0 : i32, i32, i32
  }
}

</mosaic_0001>

<bundles_post_ra>
// kernel: f0_encoder_forward.1
= control target key start
LH: loop header
LB: loop body
LE: loop exit
PB: predicated region body
PF: predicated region fallthrough
CT: control target
= control target key end

     0   :  { %11 = vsyncpa [#allocation4], 0  ;;  %s2806_s0 = inlined_call_operand.vmem [shape: f32[2,16,128], index: 0, kind: input, shape index: {}]   ;;  %s2807_s1 = inlined_call_operand.hbm [shape: f32[2,640,128], index: 1, kind: input, shape index: {}]   ;;  %s2808_s2 = inlined_call_operand.vmem [shape: f32[2,1,128], index: 2, kind: input, shape index: {}]   ;;  %s2809_s3 = inlined_call_operand.vmem [shape: f32[2,1,128], index: 3, kind: input, shape index: {}]   ;;  %s2810_s4 = inlined_call_operand.vmem [shape: f32[2,1,128], index: 4, kind: input, shape index: {}]   ;;  %s2811_s5 = inlined_call_operand.vmem [shape: f32[128,128], index: 5, kind: input, shape index: {}]   ;;  %s2812_s6 = inlined_call_operand.hbm [shape: f32[2,16,128], index: 6, kind: output, shape index: {}]  }
   0x1   :  { %12 = vsyncpa [#allocation5], 0 }
   0x2   :  { %14 = vsyncpa [#allocation5 + $0x1], 0  ;;  %s2448_s21 = smov 0   ;;  %s2450_s22 = smov 0  }
   0x3   :  { %s2452_s23 = smov 0   ;;  %s2454_s24 = smov 0  }
   0x4 LB: > { %s2469_s25 = sadd.s32 4294967295, %s2402_s24   ;;  %s1470_s26 = sadd.s32 4294967294, %s2402_s24   ;;  %s2402_s24 = sphi %s2454_s24, %s2828_s24   ;;  %s2398_s23 = sphi %s2452_s23, %s2827_s23   ;;  %s2394_s22 = sphi %s2450_s22, %s2826_s22   ;;  %s2390_s21 = sphi %s2448_s21, %s2825_s21  }
   0x5   : > { %s2473_s27 = sadd.s32 1, %s2402_s24   ;;  %s158_s28 = sadd.s32 1, %s2398_s23 }
   0x6   : > { %s155_s29 = ssub.s32 %s2402_s24, %s2473_s27  ;;  %p168_p0 = scmp.ne.s32.totalorder %s2398_s23, %s2394_s22 }
   0x7   : > { %p156_p1 = scmp.eq.s32.totalorder %s155_s29, 0  ;;  %p169_p2 = scmp.eq.s32.totalorder %s2469_s25, 1 }
   0x8   : > { %p174_p3 = scmp.ne.s32.totalorder %s2394_s22, %s2390_s21  ;;  %p175_p4 = scmp.eq.s32.totalorder %s1470_s26, 1 }
   0x9   : > { %s2484_s30 = scalar_select %p156_p1, %s2398_s23, %s158_s28  }
   0xa   : > { %p2486_p5 = por %p169_p2, %p168_p0  ;;  %p2490_p6 = por %p175_p4, %p174_p3 }
   0xb   : > { %p1471_p7 = scmp.ge.s32.totalorder %s2402_s24, 1  ;;  %p182_p8 = scmp.lt.s32.totalorder %s2402_s24, 3 }
   0xc   : > { %s2816_s7 = scalar_select %p2486_p5, 1, 0 }
   0xd   : > { %s2817_s8 = scalar_select %p2490_p6, 1, 0 }
   0xe   : > { %p2813_p9 = scmp.eq.s32.totalorder %s2469_s25, 0  ;;  %p2497_p10 = pnand %p1471_p7, %p182_p8 }
   0xf   : > { %s2404_s10 = smov [#allocation3]   ;;  %s2308_s15 = scalar_lea.hbm %s2807_s1, 20480 }
  0x10   : > { %s2818_s9 = scalar_select %p2497_p10, 1, 0 }
  0x11   : > { %s194_s11 = sshll.u32 %s2404_s10, 4  ;;  %p2253_p11 = pneg %p2497_p10  ;;  %s195_s11 = int_to_ptr.vmem [resolvable:$true] %s194_s11 }
  0x12   : > { %p2309_p13 = scmp.ne.s32.totalorder %s2807_s1, %s2308_s15  ;;  %p2315_p3 = scmp.lt.u32.totalorder %s2308_s15, %s2807_s1 }
  0x13   : > { %p2505_p12 = pnand %p2813_p9, %p2253_p11 }
  0x15   : > { %p2310_p0 = pneg %p2505_p12 }
  0x17   : > { %p2311_p1 = pnand %p2310_p0, %p2309_p13 }
  0x19   : > { %p2312_p2 = pneg %p2311_p1 }
  0x1b   : > { %p2317_p4 = pnand %p2315_p3, %p2312_p2 }
  0x1d   : > { %2320 = shalt.err (!%p2317_p4)
}
  0x1e   : > { %s2321_s20 = scalar_lea.vmem %s195_s11, 20480  ;;  %p2329_p9 = scmp.lt.s32.totalorder %s195_s11, %s195_s11 }
  0x1f   : > { %p2322_p7 = scmp.ne.s32.totalorder %s195_s11, %s2321_s20  ;;  %p2330_p6 = scmp.lt.s32.totalorder %s2321_s20, %s2321_s20 }
  0x21   : > { %p2324_p8 = pnand %p2322_p7, %p2310_p0  ;;  %p2331_p5 = por %p2330_p6, %p2329_p9 }
  0x23   : > { %p2325_p11 = pneg %p2324_p8 }
  0x25   : > { %p2332_p10 = pnand %p2331_p5, %p2325_p11 }
  0x27   : > { %2335 = shalt.err (!%p2332_p10)
}
  0x28   : > { %s2405_s26 = smov 128   ;;  %s2406_s28 = smov 8  }
  0x29   : > { %2256 = dma.hbm_to_vmem [thread:$0]  (!%p2505_p12), %s2807_s1, 20480, %s195_s11, [#allocation4], %s2405_s26, %s2405_s26, %s2406_s28  }
  0x2a   : > { %p2820_p13 = scmp.ne.s32.totalorder %s2818_s9, 0 }
  0x2b   : > { %p2821_p1 = scmp.eq.s32.totalorder (!%p2820_p13), %s2469_s25, 0 }
  0x2c   : > { %230 = sbr.rel (%p2820_p13) target bundleno = 1578 (0x62a), region = 44 }
  0x33   : > { %2381 = dma.done.wait (%p2821_p1), [#allocation4], 20480   ;;  %p2822_p0 = pmov %p2821_p1 }
  0x34   : > { %v2407_v0 = vmov 0.0   ;;  %v326_v1 = vld [vmem:[#allocation3 + $0x80] sm:$0xff]  ;;  %v327_v2 = vld [vmem:[#allocation3 + $0x88] sm:$0xff]  ;;  %v328_v12 = vld [vmem:[#allocation3 + $0x90] sm:$0xff]  ;;  %p260_p5 = scmp.lt.s32.totalorder %s2469_s25, 1  ;;  %vm278_vm0 = vcmask 1046528  }
  0x35   : > { %2383 = vsyncadd (%p2822_p0), [#allocation4], 4294946816  ;;  %265 = vst [vmem:[#allocation2] sm:$0xff] %v2407_v0  ;;  %v310_v3 = vld [vmem:[#allocation3] sm:$0xff]  ;;  %v1959_v4 = vpack.c.bf16 %v327_v2, %v326_v1  ;;  %v311_v5 = vld [vmem:[#allocation3 + $0x8] sm:$0xff]  ;;  %vm294_vm1 = vcmask 1044480  }
  0x36   : > { %266 = vst [vmem:[#allocation2 + $0x8] sm:$0xff] %v2407_v0  ;;  %267 = vst [vmem:[#allocation2 + $0x10] sm:$0xf] %v2407_v0  ;;  %v358_v6 = vld [vmem:[#allocation3 + $0x180] sm:$0xff]  ;;  %v359_v7 = vld [vmem:[#allocation3 + $0x188] sm:$0xff]  ;;  %v1961_v8 = vpack.c.bf16 %v311_v5, %v310_v3  ;;  %s2538_s9 = scalar_select %p260_p5, %s2469_s25, 1 }
  0x37   : > { %v1991_v9 = vpack.c.bf16 %v359_v7, %v358_v6  ;;  %v342_v10 = vld [vmem:[#allocation3 + $0x100] sm:$0xff]  ;;  %v343_v11 = vld [vmem:[#allocation3 + $0x108] sm:$0xff]  ;;  %1960 = vmatprep.subr.bf16.mxu0 %v1959_v4  ;;  %v329_v14 = vld [vmem:[#allocation3 + $0x98] sm:$0xff]  ;;  %vm286_vm2 = vcmask 1045504   ;;  %vm302_vm3 = vcmask 1043456   ;;  %vm2409_vm4 = vmmov 0  }
  0x38   : > { %v1993_v13 = vpack.c.bf16 %v343_v11, %v342_v10  ;;  %v312_v15 = vld [vmem:[#allocation3 + $0x10] sm:$0xff]  ;;  %v313_v16 = vld [vmem:[#allocation3 + $0x18] sm:$0xff]  ;;  %1962 = vmatpush3.bf16.msra.mxu0 %v1961_v8  ;;  %v1963_v17 = vpack.c.bf16 %v329_v14, %v328_v12  ;;  %v330_v24 = vld [vmem:[#allocation3 + $0xa0] sm:$0xff]  ;;  %s1491_s11 = sshll.u32 %s2538_s9, 4  ;;  %s257_s9 = sand.u32 1, %s2394_s22  }
  0x39   : > { %1992 = vmatprep.subr.bf16.mxu1 %v1991_v9  ;;  %v1965_v18 = vpack.c.bf16 %v313_v16, %v312_v15  ;;  %v360_v19 = vld [vmem:[#allocation3 + $0x190] sm:$0xff]  ;;  %v361_v20 = vld [vmem:[#allocation3 + $0x198] sm:$0xff]  ;;  %v331_v25 = vld [vmem:[#allocation3 + $0xa8] sm:$0xff]  ;;  %s264_s14 = scalar_lea.vmem %s2806_s0, %s1491_s11  ;;  %s1476_s13 = sshll.u32 %s257_s9, 4 }
  0x3a   : > { %v344_v21 = vld [vmem:[#allocation3 + $0x110] sm:$0xff]  ;;  %1994 = vmatpush3.bf16.msra.mxu1 %v1993_v13  ;;  %v1995_v22 = vpack.c.bf16 %v361_v20, %v360_v19  ;;  %v345_v23 = vld [vmem:[#allocation3 + $0x118] sm:$0xff]  ;;  %1964 = vmatprep.subr.bf16.mxu0 %v1963_v17  ;;  %v1967_v27 = vpack.c.bf16 %v331_v25, %v330_v24  ;;  %v314_v28 = vld [vmem:[#allocation3 + $0x20] sm:$0xff]  ;;  %s1492_s16 = sshll.u32 %s2469_s25, 8  ;;  %s259_s17 = scalar_lea.vmem [#allocation6], %s1476_s13 }
  0x3b   : > { %v1997_v26 = vpack.c.bf16 %v345_v23, %v344_v21  ;;  %v315_v29 = vld [vmem:[#allocation3 + $0x28] sm:$0xff]  ;;  %v362_v30 = vld [vmem:[#allocation3 + $0x1a0] sm:$0xff]  ;;  %v332_v36 = vld [vmem:[#allocation3 + $0xb0] sm:$0xff]  ;;  %s1396_s18 = sshll.u32 %s259_s17, 4  ;;  %s2761_s26 = scalar_lea.hbm %s2812_s6, %s1492_s16  ;;  %s2763_s18 = int_to_ptr.vmem [resolvable:$true] %s1396_s18 }
  0x3c   : > { %1996 = vmatprep.subr.bf16.mxu1 %v1995_v22  ;;  %v363_v31 = vld [vmem:[#allocation3 + $0x1a8] sm:$0xff]  ;;  %v346_v32 = vld [vmem:[#allocation3 + $0x120] sm:$0xff]  ;;  %1966 = vmatpush3.bf16.msra.mxu0 %v1965_v18  ;;  %v1969_v34 = vpack.c.bf16 %v315_v29, %v314_v28  ;;  %v333_v37 = vld [vmem:[#allocation3 + $0xb8] sm:$0xff]  ;;  %s2765_s28 = scalar_lea.sflag [#allocation5], %s257_s9  ;;  %s2336_s25 = scalar_lea.vmem %s2763_s18, 256 }
  0x3d   : > { %v347_v33 = vld [vmem:[#allocation3 + $0x128] sm:$0xff]  ;;  %v1999_v35 = vpack.c.bf16 %v363_v31, %v362_v30  ;;  %v316_v38 = vld [vmem:[#allocation3 + $0x30] sm:$0xff]  ;;  %1968 = vmatprep.subr.bf16.mxu0 %v1967_v27  ;;  %v1971_v40 = vpack.c.bf16 %v333_v37, %v332_v36  ;;  %v317_v41 = vld [vmem:[#allocation3 + $0x38] sm:$0xff]  ;;  %p2337_p6 = scmp.ne.s32.totalorder %s2763_s18, %s2336_s25  ;;  %p2823_p9 = scmp.ne.s32.totalorder %s2816_s7, 0 }
  0x3e   : > { %1998 = vmatpush3.bf16.msra.mxu1 %v1997_v26  ;;  %v2001_v39 = vpack.c.bf16 %v347_v33, %v346_v32  ;;  %v364_v42 = vld [vmem:[#allocation3 + $0x1b0] sm:$0xff]  ;;  %v365_v43 = vld [vmem:[#allocation3 + $0x1b8] sm:$0xff]  ;;  %v334_v47 = vld [vmem:[#allocation3 + $0xc0] sm:$0xff]  ;;  %v1973_v49 = vpack.c.bf16 %v317_v41, %v316_v38  ;;  %s2410_s29 = smov [#allocation6]  }
  0x3f   : > { %2000 = vmatprep.subr.bf16.mxu1 %v1999_v35  ;;  %v2003_v44 = vpack.c.bf16 %v365_v43, %v364_v42  ;;  %v348_v45 = vld [vmem:[#allocation3 + $0x130] sm:$0xff]  ;;  %v349_v46 = vld [vmem:[#allocation3 + $0x138] sm:$0xff]  ;;  %v335_v48 = vld [vmem:[#allocation3 + $0xc8] sm:$0xff]  ;;  %p2338_p10 = pnand %p2337_p6, %p2823_p9  ;;  %s2340_s10 = sshll.u32 %s2410_s29, 4  ;;  %s2341_s10 = int_to_ptr.vmem [resolvable:$false] %s2340_s10 }
  0x40   : > { %1970 = vmatpush3.bf16.msra.mxu0 %v1969_v34  ;;  %v366_v50 = vld [vmem:[#allocation3 + $0x1c0] sm:$0xff]  ;;  %v367_v51 = vld [vmem:[#allocation3 + $0x1c8] sm:$0xff]  ;;  %v2005_v52 = vpack.c.bf16 %v349_v46, %v348_v45  ;;  %v1975_v53 = vpack.c.bf16 %v335_v48, %v334_v47  ;;  %v336_v59 = vld [vmem:[#allocation3 + $0xd0] sm:$0xff]  ;;  %s2342_s11 = scalar_lea.vmem %s2341_s10, 512  ;;  %p2343_p2 = scmp.lt.s32.totalorder %s2763_s18, %s2341_s10 }
  0x41   : > { %1972 = vmatprep.subr.bf16.mxu0 %v1971_v40  ;;  %v318_v54 = vld [vmem:[#allocation3 + $0x40] sm:$0xff]  ;;  %v319_v55 = vld [vmem:[#allocation3 + $0x48] sm:$0xff]  ;;  %v2007_v57 = vpack.c.bf16 %v367_v51, %v366_v50  ;;  %v337_v60 = vld [vmem:[#allocation3 + $0xd8] sm:$0xff]  ;;  %p2339_p12 = pneg %p2338_p10  ;;  %p2344_p3 = scmp.lt.s32.totalorder %s2342_s11, %s2336_s25 }
  0x42   : > { %2002 = vmatpush3.bf16.msra.mxu1 %v2001_v39  ;;  %v350_v56 = vld [vmem:[#allocation3 + $0x140] sm:$0xff]  ;;  %v351_v58 = vld [vmem:[#allocation3 + $0x148] sm:$0xff]  ;;  %v368_v61 = vld [vmem:[#allocation3 + $0x1d0] sm:$0xff]  ;;  %v1977_v63 = vpack.c.bf16 %v319_v55, %v318_v54  ;;  %v1979_v2 = vpack.c.bf16 %v337_v60, %v336_v59 }
  0x43   : > { %2004 = vmatprep.subr.bf16.mxu1 %v2003_v44  ;;  %v369_v62 = vld [vmem:[#allocation3 + $0x1d8] sm:$0xff]  ;;  %v2009_v1 = vpack.c.bf16 %v351_v58, %v350_v56  ;;  %v320_v3 = vld [vmem:[#allocation3 + $0x50] sm:$0xff]  ;;  %v338_v8 = vld [vmem:[#allocation3 + $0xe0] sm:$0xff]  ;;  %p2345_p4 = por %p2344_p3, %p2343_p2 }
  0x44   : > { %1974 = vmatpush3.bf16.msra.mxu0 %v1973_v49  ;;  %v321_v4 = vld [vmem:[#allocation3 + $0x58] sm:$0xff]  ;;  %v352_v5 = vld [vmem:[#allocation3 + $0x150] sm:$0xff]  ;;  %v2011_v6 = vpack.c.bf16 %v369_v62, %v368_v61  ;;  %v339_v9 = vld [vmem:[#allocation3 + $0xe8] sm:$0xff] }
  0x45   : > { %1976 = vmatprep.subr.bf16.mxu0 %v1975_v53  ;;  %v353_v7 = vld [vmem:[#allocation3 + $0x158] sm:$0xff]  ;;  %v370_v10 = vld [vmem:[#allocation3 + $0x1e0] sm:$0xff]  ;;  %v371_v11 = vld [vmem:[#allocation3 + $0x1e8] sm:$0xff]  ;;  %v1981_v12 = vpack.c.bf16 %v321_v4, %v320_v3  ;;  %v1983_v16 = vpack.c.bf16 %v339_v9, %v338_v8  ;;  %p2346_p7 = pnand %p2345_p4, %p2339_p12 }
  0x46   : > { %2006 = vmatpush3.bf16.msra.mxu1 %v2005_v52  ;;  %v322_v13 = vld [vmem:[#allocation3 + $0x60] sm:$0xff]  ;;  %v268_v14 = vld [vmem:[%s264_s14] sm:$0xff]  ;;  %v2013_v15 = vpack.c.bf16 %v353_v7, %v352_v5  ;;  %v323_v17 = vld [vmem:[#allocation3 + $0x68] sm:$0xff]  ;;  %v2015_v20 = vpack.c.bf16 %v371_v11, %v370_v10 }
  0x47   : > { %2008 = vmatprep.subr.bf16.mxu1 %v2007_v57  ;;  %v354_v18 = vld [vmem:[#allocation3 + $0x160] sm:$0xff]  ;;  %v269_v19 = vld [vmem:[%s264_s14 + $0x8] sm:$0xff]  ;;  %270 = vst [vmem:[#allocation2 + $0x2] sm:$0xff] %v268_v14  ;;  %v355_v21 = vld [vmem:[#allocation3 + $0x168] sm:$0xff]  ;;  %v1985_v26 = vpack.c.bf16 %v323_v17, %v322_v13 }
  0x48   : > { %1978 = vmatpush3.bf16.msra.mxu0 %v1977_v63  ;;  %v340_v22 = vld [vmem:[#allocation3 + $0xf0] sm:$0xff]  ;;  %v341_v23 = vld [vmem:[#allocation3 + $0xf8] sm:$0xff]  ;;  %271 = vst [vmem:[#allocation2 + $0xa] sm:$0xff] %v269_v19  ;;  %v2017_v28 = vpack.c.bf16 %v355_v21, %v354_v18  ;;  %v374_v34 = vld [vmem:[#allocation3 + $0x200] sm:$0xff] }
  0x49   : > { %1980 = vmatprep.subr.bf16.mxu0 %v1979_v2  ;;  %v372_v24 = vld [vmem:[#allocation3 + $0x1f0] sm:$0xff]  ;;  %v373_v25 = vld [vmem:[#allocation3 + $0x1f8] sm:$0xff]  ;;  %v1987_v29 = vpack.c.bf16 %v341_v23, %v340_v22  ;;  %v375_v35 = vld [vmem:[#allocation3 + $0x208] sm:$0xff]  ;;  %v2408_v23 = vmov 0.0|0.0  }
  0x4a   : > { %2010 = vmatpush3.bf16.msra.mxu1 %v2009_v1  ;;  %v324_v27 = vld [vmem:[#allocation3 + $0x70] sm:$0xff]  ;;  %v325_v30 = vld [vmem:[#allocation3 + $0x78] sm:$0xff]  ;;  %v2019_v33 = vpack.c.bf16 %v373_v25, %v372_v24  ;;  %v2023_v41 = vpack.c.bf16 %v375_v35, %v374_v34  ;;  %v378_v57 = vld [vmem:[#allocation3 + $0x220] sm:$0xff] }
  0x4b   : > { %2012 = vmatprep.subr.bf16.mxu1 %v2011_v6  ;;  %v356_v31 = vld [vmem:[#allocation3 + $0x170] sm:$0xff]  ;;  %v357_v32 = vld [vmem:[#allocation3 + $0x178] sm:$0xff]  ;;  %v1989_v36 = vpack.c.bf16 %v325_v30, %v324_v27  ;;  %v379_v58 = vld [vmem:[#allocation3 + $0x228] sm:$0xff] }
  0x4c   : > { %1982 = vmatpush3.bf16.msra.mxu0 %v1981_v12  ;;  %v2021_v38 = vpack.c.bf16 %v357_v32, %v356_v31  ;;  %v376_v48 = vld [vmem:[#allocation3 + $0x210] sm:$0xff]  ;;  %v377_v49 = vld [vmem:[#allocation3 + $0x218] sm:$0xff]  ;;  %v2031_v63 = vpack.c.bf16 %v379_v58, %v378_v57  ;;  %v382_v6 = vld [vmem:[#allocation3 + $0x240] sm:$0xff] }
  0x4d   : > { %1984 = vmatprep.subr.bf16.mxu0 %v1983_v16  ;;  %v2027_v55 = vpack.c.bf16 %v377_v49, %v376_v48  ;;  %v380_v2 = vld [vmem:[#allocation3 + $0x230] sm:$0xff]  ;;  %v381_v3 = vld [vmem:[#allocation3 + $0x238] sm:$0xff]  ;;  %v383_v7 = vld [vmem:[#allocation3 + $0x248] sm:$0xff] }
  0x4e   : > { %2014 = vmatpush3.bf16.msra.mxu1 %v2013_v15  ;;  %v272_v37 = vld [vmem:[#allocation2] sm:$0xff]  ;;  %v2035_v5 = vpack.c.bf16 %v381_v3, %v380_v2  ;;  %v2039_v8 = vpack.c.bf16 %v383_v7, %v382_v6  ;;  %v384_v9 = vld [vmem:[#allocation3 + $0x250] sm:$0xff]  ;;  %v385_v10 = vld [vmem:[#allocation3 + $0x258] sm:$0xff] }
  0x4f   : > { %2016 = vmatprep.subr.bf16.mxu1 %v2015_v20  ;;  %v2544_v39 = vld [vmem:[#allocation2 + $0x8] sm:$0xff]  ;;  %v279_v40 = vrot.slane %v272_v37, 1  ;;  %v295_v42 = vrot.slane %v272_v37, 3  ;;  %v287_v43 = vrot.slane %v272_v37, 2  ;;  %v2546_v44 = vld [vmem:[#allocation2 + $0x10] sm:$0xf]  ;;  %v2043_v11 = vpack.c.bf16 %v385_v10, %v384_v9 }
  0x50   : > { %1986 = vmatpush3.bf16.msra.mxu0 %v1985_v26  ;;  %v280_v45 = vrot.slane %v2544_v39, 1  ;;  %v296_v46 = vrot.slane %v2544_v39, 3  ;;  %v288_v47 = vrot.slane %v2544_v39, 2  ;;  %v282_v50 = vrot.slane %v2546_v44, 1  ;;  %v386_v12 = vld [vmem:[#allocation3 + $0x260] sm:$0xff]  ;;  %v387_v13 = vld [vmem:[#allocation3 + $0x268] sm:$0xff] }
  0x51   : > { %1988 = vmatprep.subr.bf16.mxu0 %v1987_v29  ;;  %v298_v51 = vrot.slane %v2546_v44, 3  ;;  %v290_v56 = vrot.slane %v2546_v44, 2  ;;  %v303_v60 = vrot.slane %v272_v37, 4  ;;  %v304_v61 = vrot.slane %v2544_v39, 4  ;;  %v388_v15 = vld [vmem:[#allocation3 + $0x270] sm:$0xff]  ;;  %v389_v16 = vld [vmem:[#allocation3 + $0x278] sm:$0xff] }
  0x52   : > { %2018 = vmatpush3.bf16.msra.mxu1 %v2017_v28  ;;  %v281_v52 = vsel %vm278_vm0, %v279_v40, %v280_v45  ;;  %v297_v53 = vsel %vm294_vm1, %v295_v42, %v296_v46  ;;  %v289_v54 = vsel %vm286_vm2, %v287_v43, %v288_v47  ;;  %v283_v59 = vsel %vm278_vm0, %v280_v45, %v282_v50  ;;  %v629_v20 = vld [vmem:[%s2811_s5] sm:$0xff]  ;;  %v630_v21 = vld [vmem:[%s2811_s5 + $0x8] sm:$0xff]  ;;  %v631_v22 = vld [vmem:[%s2811_s5 + $0x10] sm:$0xff] }
  0x53   : > { %2020 = vmatprep.subr.bf16.mxu1 %v2019_v33  ;;  %461 = vmatprep.mubr.f32.mxu0 %v281_v52  ;;  %v299_v62 = vsel %vm294_vm1, %v296_v46, %v298_v51  ;;  %v291_v1 = vsel %vm286_vm2, %v288_v47, %v290_v56  ;;  %v305_v4 = vsel %vm302_vm3, %v303_v60, %v304_v61  ;;  %v306_v18 = vrot.slane %v2546_v44, 4  ;;  %v632_v25 = vld [vmem:[%s2811_s5 + $0x18] sm:$0xff]  ;;  %v633_v27 = vld [vmem:[%s2811_s5 + $0x20] sm:$0xff]  ;;  %v634_v28 = vld [vmem:[%s2811_s5 + $0x28] sm:$0xff] }
  0x54   : > { %1990 = vmatpush3.bf16.msra.mxu0 %v1989_v36  ;;  %536 = vmatprep.mubr.f32.mxu1 %v297_v53  ;;  %v2047_v14 = vpack.c.bf16 %v387_v13, %v386_v12  ;;  %v2051_v17 = vpack.c.bf16 %v389_v16, %v388_v15  ;;  %v2575_v24 = vpack.c.bf16 %v630_v21, %v629_v20  ;;  %v635_v30 = vld [vmem:[%s2811_s5 + $0x30] sm:$0xff]  ;;  %v636_v31 = vld [vmem:[%s2811_s5 + $0x38] sm:$0xff]  ;;  %v637_v33 = vld [vmem:[%s2811_s5 + $0x40] sm:$0xff]  ;;  %v716_v10 = vlaneseq }
  0x55   : > { %2024 = vmatprep.subr.bf16.mxu0 %v2023_v41  ;;  %v307_v19 = vsel %vm302_vm3, %v304_v61, %v306_v18  ;;  %v2582_v26 = vpack.c.bf16 %v632_v25, %v631_v22  ;;  %v2594_v29 = vpack.c.bf16 %v634_v28, %v633_v27  ;;  %v2606_v32 = vpack.c.bf16 %v636_v31, %v635_v30  ;;  %v638_v34 = vld [vmem:[%s2811_s5 + $0x48] sm:$0xff]  ;;  %v639_v36 = vld [vmem:[%s2811_s5 + $0x50] sm:$0xff]  ;;  %v644_v43 = vld [vmem:[%s2811_s5 + $0x78] sm:$0xff] }
  0x56   : > { %2022 = vmatpush3.bf16.msra.mxu1 %v2021_v38  ;;  %v2621_v35 = vpack.c.bf16 %v638_v34, %v637_v33  ;;  %v642_v40 = vld [vmem:[%s2811_s5 + $0x68] sm:$0xff]  ;;  %v643_v42 = vld [vmem:[%s2811_s5 + $0x70] sm:$0xff]  ;;  %v1479_v46 = vld [vmem:[%s2808_s2] ss:$0 sm:$0xff] }
  0x57   : > { %462 = vmatmul.mubr.f32.vlgmr.msra.gmra.mrb[0].mxu0 %v272_v37  ;;  %2055 = vmatprep.subr.bf16.mxu1 %v2408_v23  ;;  %v640_v37 = vld [vmem:[%s2811_s5 + $0x58] sm:$0xff]  ;;  %v2657_v44 = vpack.c.bf16 %v644_v43, %v643_v42  ;;  %v878_v33 = vld [vmem:[#allocation3 + $0x300] sm:$0xff] }
  0x58   : > { %2026 = vmatpush3.bf16.msra.mxu0 %v2023_v41  ;;  %466 = vmatprep.mubr.f32.mxu0 %v283_v59  ;;  %v2633_v38 = vpack.c.bf16 %v640_v37, %v639_v36  ;;  %v879_v34 = vld [vmem:[#allocation3 + $0x308] sm:$0xff]  ;;  %v862_v37 = vld [vmem:[#allocation3 + $0x280] sm:$0xff] }
  0x59   : > { %537 = vmatmul.mubr.f32.vlgmr.msra.gmra.mrb[0].mxu1 %v289_v54  ;;  %2028 = vmatprep.subr.bf16.mxu0 %v2027_v55  ;;  %v2103_v36 = vpack.c.bf16 %v879_v34, %v878_v33  ;;  %v911_v43 = vld [vmem:[#allocation3 + $0x408] sm:$0xff]  ;;  %v870_v33 = vld [vmem:[#allocation3 + $0x2c0] sm:$0xff] }
  0x5a   : > { %541 = vmatprep.mubr.f32.mxu1 %v299_v62  ;;  %2057 = vmatpush3.bf16.msra.mxu1 %v2575_v24  ;;  %v871_v34 = vld [vmem:[#allocation3 + $0x2c8] sm:$0xff] }
  0x5b   : > { %467 = vmatmul.mubr.f32.gmra.mrb[2].mxu0 %v2544_v39  ;;  %2058 = vmatprep.subr.bf16.mxu1 %v2408_v23  ;;  %v641_v39 = vld [vmem:[%s2811_s5 + $0x60] sm:$0xff] }
  0x5c   : > { %2030 = vmatpush3.bf16.msra.mxu0 %v2027_v55  ;;  %1781 = vmatprep.mubr.f32.mxu0 %v305_v4  ;;  %v2645_v41 = vpack.c.bf16 %v642_v40, %v641_v39  ;;  %v863_v39 = vld [vmem:[#allocation3 + $0x288] sm:$0xff]  ;;  %v910_v40 = vld [vmem:[#allocation3 + $0x400] sm:$0xff] }
  0x5d   : > { %542 = vmatmul.mubr.f32.gmra.mrb[2].mxu1 %v291_v1  ;;  %2032 = vmatprep.subr.bf16.mxu0 %v2031_v63  ;;  %v2105_v42 = vpack.c.bf16 %v863_v39, %v862_v37  ;;  %v2121_v37 = vpack.c.bf16 %v871_v34, %v870_v33  ;;  %v919_v39 = vld [vmem:[#allocation3 + $0x448] sm:$0xff]  ;;  %v802_v34 = vld [vmem:[%s2809_s3] sm:$0x1] }
  0x5e   : > { %2060 = vmatpush3.bf16.msra.mxu1 %v2582_v26  ;;  %1816 = vmatprep.mubr.msk.f32.mxu1 %vm2409_vm4, %v2407_v0 }
  0x5f   : > { %2061 = vmatprep.subr.bf16.mxu1 %v2408_v23 }
  0x60   : > { %2034 = vmatpush3.bf16.msra.mxu0 %v2031_v63 }
  0x61   : > { %2036 = vmatprep.subr.bf16.mxu0 %v2035_v5 }
  0x62   : > { %2063 = vmatpush3.bf16.msra.mxu1 %v2594_v29 }
  0x63   : > { %2064 = vmatprep.subr.bf16.mxu1 %v2408_v23 }
  0x64   : > { %2038 = vmatpush3.bf16.msra.mxu0 %v2035_v5 }
  0x65   : > { %2040 = vmatprep.subr.bf16.mxu0 %v2039_v8 }
  0x66   : > { %2066 = vmatpush3.bf16.msra.mxu1 %v2606_v32 }
  0x67   : > { %2067 = vmatprep.subr.bf16.mxu1 %v2408_v23 }
  0x68   : > { %2042 = vmatpush3.bf16.msra.mxu0 %v2039_v8 }
  0x69   : > { %2044 = vmatprep.subr.bf16.mxu0 %v2043_v11 }
  0x6a   : > { %2069 = vmatpush3.bf16.msra.mxu1 %v2621_v35 }
  0x6b   : > { %2070 = vmatprep.subr.bf16.mxu1 %v2408_v23 }
  0x6c   : > { %2046 = vmatpush3.bf16.msra.mxu0 %v2043_v11  ;;  %v717_v11 = vshrl.u32 %v716_v10, 7  ;;  %v884_v10 = vld [vmem:[#allocation3 + $0x330] sm:$0xff] }
  0x6d   : > { %2048 = vmatprep.subr.bf16.mxu0 %v2047_v14 }
  0x6e   : > { %2072 = vmatpush3.bf16.msra.mxu1 %v2633_v38  ;;  %v2668_v12 = vsub.s32 0, %v717_v11  ;;  %v885_v11 = vld [vmem:[#allocation3 + $0x338] sm:$0xff] }
  0x6f   : > { %2073 = vmatprep.subr.bf16.mxu1 %v2408_v23 }
  0x70   : > { %2050 = vmatpush3.bf16.msra.mxu0 %v2047_v14 }
  0x71   : > { %2052 = vmatprep.subr.bf16.mxu0 %v2051_v17 }
  0x72   : > { %2075 = vmatpush3.bf16.msra.mxu1 %v2645_v41 }
  0x73   : > { %2076 = vmatprep.subr.bf16.mxu1 %v2408_v23 }
  0x74   : > { %2054 = vmatpush3.bf16.msra.mxu0 %v2051_v17 }
  0x75   : > { %2079 = vmatprep.subr.bf16.mxu0 %v2408_v23 }
  0x76   : > { %2078 = vmatpush3.bf16.msra.mxu1 %v2657_v44 }
  0x77   : > { %1782 = vmatmul.mubr.f32.vlgmr.msra.gmra.mrb[4].mxu0 %v307_v19  ;;  %2104 = vmatprep.subr.bf16.mxu1 %v2103_v36  ;;  %v918_v36 = vld [vmem:[#allocation3 + $0x440] sm:$0xff] }
  0x78   : > { %2081 = vmatpush3.bf16.msra.mxu0 %v2575_v24  ;;  %1851 = vmatprep.mubr.msk.f32.mxu0 %vm2409_vm4, %v2407_v0 }
  0x79   : > { %2082 = vmatprep.subr.bf16.mxu0 %v2408_v23 }
  0x7c   : > { %2084 = vmatpush3.bf16.msra.mxu0 %v2582_v26 }
  0x7d   : > { %2085 = vmatprep.subr.bf16.mxu0 %v2408_v23 }
  0x80   : > { %2087 = vmatpush3.bf16.msra.mxu0 %v2594_v29 }
  0x81   : > { %2088 = vmatprep.subr.bf16.mxu0 %v2408_v23 }
  0x84   : > { %2090 = vmatpush3.bf16.msra.mxu0 %v2606_v32 }
  0x85   : > { %2091 = vmatprep.subr.bf16.mxu0 %v2408_v23 }
  0x88   : > { %2093 = vmatpush3.bf16.msra.mxu0 %v2621_v35 }
  0x89   : > { %2094 = vmatprep.subr.bf16.mxu0 %v2408_v23 }
  0x8c   : > { %2096 = vmatpush3.bf16.msra.mxu0 %v2633_v38 }
  0x8d   : > { %2097 = vmatprep.subr.bf16.mxu0 %v2408_v23 }
  0x90   : > { %2099 = vmatpush3.bf16.msra.mxu0 %v2645_v41 }
  0x91   : > { %2100 = vmatprep.subr.bf16.mxu0 %v2408_v23 }
  0x94   : > { %2102 = vmatpush3.bf16.msra.mxu0 %v2657_v44 }
 0x12a   : > { %v1525_v45 = vpop.f32.mrb[0].mxu0 }
 0x12b   : > { %v1526_v47 = vpop.f32.mrb[1].mxu0 }
 0x12c   : > { %v1563_v48 = vpop.f32.mrb[0].mxu1  ;;  %v1527_v49 = vadd.f32 %v1526_v47, %v1525_v45  ;;  %v894_v45 = vld [vmem:[#allocation3 + $0x380] sm:$0xff]  ;;  %v2135_v47 = vpack.c.bf16 %v911_v43, %v910_v40  ;;  %v903_v43 = vld [vmem:[#allocation3 + $0x3c8] sm:$0xff] }
 0x12d   : > { %v1564_v50 = vpop.f32.mrb[1].mxu1  ;;  %v902_v40 = vld [vmem:[#allocation3 + $0x3c0] sm:$0xff] }
 0x12e   : > { %v1565_v51 = vadd.f32 %v1564_v50, %v1563_v48  ;;  %v464_v52 = vadd.f32 %v1527_v49, %v1479_v46  ;;  %v1528_v53 = vpop.f32.mrb[2].mxu0  ;;  %v880_v49 = vld [vmem:[#allocation3 + $0x310] sm:$0xff]  ;;  %v881_v50 = vld [vmem:[#allocation3 + $0x318] sm:$0xff]  ;;  %2136 = vmatprep.subr.bf16.mxu0 %v2135_v47 }
 0x12f   : > { %v1529_v54 = vpop.f32.mrb[3].mxu0  ;;  %v889_v47 = vld [vmem:[#allocation3 + $0x358] sm:$0xff] }
 0x130   : > { %v1566_v55 = vpop.f32.mrb[2].mxu1  ;;  %v1530_v56 = vadd.f32 %v1529_v54, %v1528_v53  ;;  %v539_v58 = vadd.f32 %v1565_v51, %v464_v52  ;;  %v2107_v51 = vpack.c.bf16 %v881_v50, %v880_v49  ;;  %v864_v52 = vld [vmem:[#allocation3 + $0x290] sm:$0xff]  ;;  %v865_v53 = vld [vmem:[#allocation3 + $0x298] sm:$0xff] }
 0x131   : > { %v1567_v57 = vpop.f32.mrb[3].mxu1  ;;  %v912_v54 = vld [vmem:[#allocation3 + $0x410] sm:$0xff]  ;;  %v873_v50 = vld [vmem:[#allocation3 + $0x2d8] sm:$0xff] }
 0x132   : > { %v1568_v59 = vadd.f32 %v1567_v57, %v1566_v55  ;;  %v469_v60 = vadd.f32 %v1530_v56, %v1479_v46  ;;  %v895_v46 = vld [vmem:[#allocation3 + $0x388] sm:$0xff]  ;;  %v2109_v55 = vpack.c.bf16 %v865_v53, %v864_v52  ;;  %v913_v56 = vld [vmem:[#allocation3 + $0x418] sm:$0xff]  ;;  %v896_v57 = vld [vmem:[#allocation3 + $0x390] sm:$0xff] }
 0x133   : > { %v2137_v48 = vpack.c.bf16 %v895_v46, %v894_v45  ;;  %v2153_v45 = vpack.c.bf16 %v903_v43, %v902_v40  ;;  %v888_v46 = vld [vmem:[#allocation3 + $0x350] sm:$0xff]  ;;  %v921_v53 = vld [vmem:[#allocation3 + $0x458] sm:$0xff] }
 0x134   : > { %v544_v61 = vadd.f32 %v1568_v59, %v469_v60  ;;  %v2139_v59 = vpack.c.bf16 %v913_v56, %v912_v54  ;;  %v872_v49 = vld [vmem:[#allocation3 + $0x2d0] sm:$0xff] }
 0x135   : > { %v2125_v52 = vpack.c.bf16 %v873_v50, %v872_v49  ;;  %v904_v54 = vld [vmem:[#allocation3 + $0x3d0] sm:$0xff]  ;;  %v929_v50 = vld [vmem:[#allocation3 + $0x498] sm:$0xff] }
 0x136   : > { %v1480_v40 = vld [vmem:[%s2810_s4] ss:$0 sm:$0xff] }
 0x137   : > { %v928_v49 = vld [vmem:[#allocation3 + $0x490] sm:$0xff] }
 0x14a   : > { %v1783_v62 = vpop.f32.mrb[4].mxu0 }
 0x14b   : > { %v619_v63 = vadd.f32 %v1783_v62, %v544_v61  ;;  %v613_v1 = vpop.f32.mrb[5].mxu0  ;;  %v882_v61 = vld [vmem:[#allocation3 + $0x320] sm:$0xff]  ;;  %v883_v62 = vld [vmem:[#allocation3 + $0x328] sm:$0xff] }
 0x14c   : > { %v614_v2 = vadd.f32 %v613_v1, %v539_v58  ;;  %v897_v58 = vld [vmem:[#allocation3 + $0x398] sm:$0xff]  ;;  %v866_v1 = vld [vmem:[#allocation3 + $0x2a0] sm:$0xff] }
 0x14d   : > { %v2141_v60 = vpack.c.bf16 %v897_v58, %v896_v57  ;;  %v890_v58 = vld [vmem:[#allocation3 + $0x360] sm:$0xff] }
 0x14e   : > { %v622_v3 = vadd.f32 %v619_v63, %v614_v2 }
 0x150   : > { %v623_v4 = vrot.slane %v622_v3, 4 }
 0x152   : > { %v624_v5 = vadd.f32 %v623_v4, %v622_v3  ;;  %v914_v3 = vld [vmem:[#allocation3 + $0x420] sm:$0xff] }
 0x154   : > { %v625_v6 = vrot.slane %v624_v5, 2 }
 0x156   : > { %v626_v7 = vadd.f32 %v625_v6, %v624_v5  ;;  %v915_v5 = vld [vmem:[#allocation3 + $0x428] sm:$0xff]  ;;  %v898_v6 = vld [vmem:[#allocation3 + $0x3a0] sm:$0xff] }
 0x158   : > { %v627_v8 = vrot.slane %v626_v7, 1 }
 0x15a   : > { %v628_v9 = vadd.f32 %v627_v8, %v626_v7  ;;  %v899_v7 = vld [vmem:[#allocation3 + $0x3a8] sm:$0xff]  ;;  %v2143_v8 = vpack.c.bf16 %v915_v5, %v914_v3 }
 0x15b   : > { %v907_v5 = vld [vmem:[#allocation3 + $0x3e8] sm:$0xff] }
 0x15c   : > { %1817 = vmatmul.mubr.f32.vlgmr.msra.gmra.mrb[4].mxu1 %v628_v9  ;;  %v2145_v9 = vpack.c.bf16 %v899_v7, %v898_v6  ;;  %v892_v6 = vld [vmem:[#allocation3 + $0x370] sm:$0xff] }
 0x15d   : > { %2106 = vmatpush3.bf16.msra.mxu1 %v2105_v42  ;;  %v2151_v42 = vpack.c.bf16 %v919_v39, %v918_v36 }
 0x15e   : > { %2108 = vmatprep.subr.bf16.mxu1 %v2107_v51  ;;  %v920_v51 = vld [vmem:[#allocation3 + $0x450] sm:$0xff] }
 0x15f   : > { %v2155_v56 = vpack.c.bf16 %v921_v53, %v920_v51 }
 0x161   : > { %2110 = vmatpush3.bf16.msra.mxu1 %v2109_v55  ;;  %v905_v55 = vld [vmem:[#allocation3 + $0x3d8] sm:$0xff] }
 0x162   : > { %v2157_v57 = vpack.c.bf16 %v905_v55, %v904_v54 }
 0x22f   : > { %v711_v13 = vpop.f32.mrb[4].mxu1 }
 0x230   : > { %v715_v14 = vmul.f32 0.0625, %v711_v13  ;;  %v1818_v15 = vpop.f32.mrb[5].mxu1  ;;  %v2115_v13 = vpack.c.bf16 %v885_v11, %v884_v10  ;;  %v877_v10 = vld [vmem:[#allocation3 + $0x2f8] sm:$0xff] }
 0x231   : > { %v869_v15 = vld [vmem:[#allocation3 + $0x2b8] sm:$0xff] }
 0x232   : > { %v719_v16 = vrot.slane %v715_v14, %v2668_v12  ;;  %v868_v14 = vld [vmem:[#allocation3 + $0x2b0] sm:$0xff] }
 0x234   : > { %v2671_v17 = vsub.f32 %v614_v2, %v719_v16  ;;  %v2673_v18 = vsub.f32 %v619_v63, %v719_v16  ;;  %v2111_v63 = vpack.c.bf16 %v883_v62, %v882_v61  ;;  %v867_v2 = vld [vmem:[#allocation3 + $0x2a8] sm:$0xff]  ;;  %v916_v16 = vld [vmem:[#allocation3 + $0x430] sm:$0xff] }
 0x235   : > { %v2113_v4 = vpack.c.bf16 %v867_v2, %v866_v1  ;;  %v875_v62 = vld [vmem:[#allocation3 + $0x2e8] sm:$0xff] }
 0x236   : > { %v722_v19 = vmul.f32 %v2671_v17, %v2671_v17  ;;  %v723_v20 = vmul.f32 %v2673_v18, %v2673_v18  ;;  %2112 = vmatprep.subr.bf16.mxu1 %v2111_v63  ;;  %v922_v63 = vld [vmem:[#allocation3 + $0x460] sm:$0xff]  ;;  %v923_v1 = vld [vmem:[#allocation3 + $0x468] sm:$0xff] }
 0x237   : > { %2114 = vmatpush3.bf16.msra.mxu1 %v2113_v4  ;;  %v2159_v3 = vpack.c.bf16 %v923_v1, %v922_v63  ;;  %v906_v4 = vld [vmem:[#allocation3 + $0x3e0] sm:$0xff] }
 0x238   : > { %v724_v21 = vadd.f32 %v723_v20, %v722_v19  ;;  %v2117_v19 = vpack.c.bf16 %v869_v15, %v868_v14  ;;  %v917_v20 = vld [vmem:[#allocation3 + $0x438] sm:$0xff]  ;;  %2116 = vmatprep.subr.bf16.mxu1 %v2115_v13  ;;  %v2161_v7 = vpack.c.bf16 %v907_v5, %v906_v4  ;;  %v924_v14 = vld [vmem:[#allocation3 + $0x470] sm:$0xff] }
 0x239   : > { %v925_v15 = vld [vmem:[#allocation3 + $0x478] sm:$0xff] }
 0x23a   : > { %v725_v22 = vrot.slane %v724_v21, 4 }
 0x23b   : > { %2118 = vmatpush3.bf16.msra.mxu1 %v2117_v19  ;;  %v2163_v19 = vpack.c.bf16 %v925_v15, %v924_v14  ;;  %v934_v15 = vld [vmem:[#allocation3 + $0x4c0] sm:$0xff] }
 0x23c   : > { %v726_v25 = vadd.f32 %v725_v22, %v724_v21  ;;  %v900_v21 = vld [vmem:[#allocation3 + $0x3b0] sm:$0xff]  ;;  %v901_v22 = vld [vmem:[#allocation3 + $0x3b8] sm:$0xff] }
 0x23e   : > { %v727_v27 = vrot.slane %v726_v25, 2 }
 0x240   : > { %v728_v28 = vadd.f32 %v727_v27, %v726_v25  ;;  %v2147_v25 = vpack.c.bf16 %v917_v20, %v916_v16  ;;  %v2149_v27 = vpack.c.bf16 %v901_v22, %v900_v21  ;;  %v908_v16 = vld [vmem:[#allocation3 + $0x3f0] sm:$0xff]  ;;  %v909_v20 = vld [vmem:[#allocation3 + $0x3f8] sm:$0xff]  ;;  %v926_v22 = vld [vmem:[#allocation3 + $0x480] sm:$0xff] }
 0x241   : > { %v2165_v21 = vpack.c.bf16 %v909_v20, %v908_v16  ;;  %v935_v16 = vld [vmem:[#allocation3 + $0x4c8] sm:$0xff]  ;;  %v936_v20 = vld [vmem:[#allocation3 + $0x4d0] sm:$0xff] }
 0x242   : > { %v729_v30 = vrot.slane %v728_v28, 1 }
 0x244   : > { %v730_v31 = vadd.f32 %v729_v30, %v728_v28  ;;  %v886_v28 = vld [vmem:[#allocation3 + $0x340] sm:$0xff]  ;;  %v887_v30 = vld [vmem:[#allocation3 + $0x348] sm:$0xff] }
 0x246   : > { %1852 = vmatmul.mubr.f32.vlgmr.msra.gmra.mrb[6].mxu0 %v730_v31  ;;  %v2119_v31 = vpack.c.bf16 %v887_v30, %v886_v28 }
 0x247   : > { %2138 = vmatpush3.bf16.msra.mxu0 %v2137_v48  ;;  %v2123_v48 = vpack.c.bf16 %v889_v47, %v888_v46 }
 0x248   : > { %2140 = vmatprep.subr.bf16.mxu0 %v2139_v59  ;;  %2120 = vmatprep.subr.bf16.mxu1 %v2119_v31  ;;  %v891_v59 = vld [vmem:[#allocation3 + $0x368] sm:$0xff] }
 0x249   : > { %2122 = vmatpush3.bf16.msra.mxu1 %v2121_v37  ;;  %v2127_v61 = vpack.c.bf16 %v891_v59, %v890_v58 }
 0x24a   : > { %2124 = vmatprep.subr.bf16.mxu1 %v2123_v48 }
 0x24b   : > { %2142 = vmatpush3.bf16.msra.mxu0 %v2141_v60  ;;  %v874_v60 = vld [vmem:[#allocation3 + $0x2e0] sm:$0xff] }
 0x24c   : > { %2144 = vmatprep.subr.bf16.mxu0 %v2143_v8  ;;  %v2129_v2 = vpack.c.bf16 %v875_v62, %v874_v60  ;;  %v893_v8 = vld [vmem:[#allocation3 + $0x378] sm:$0xff]  ;;  %v2171_v62 = vpack.c.bf16 %v929_v50, %v928_v49 }
 0x24d   : > { %2126 = vmatpush3.bf16.msra.mxu1 %v2125_v52  ;;  %v2131_v11 = vpack.c.bf16 %v893_v8, %v892_v6 }
 0x24e   : > { %2128 = vmatprep.subr.bf16.mxu1 %v2127_v61 }
 0x24f   : > { %2146 = vmatpush3.bf16.msra.mxu0 %v2145_v9  ;;  %v876_v9 = vld [vmem:[#allocation3 + $0x2f0] sm:$0xff] }
 0x250   : > { %2148 = vmatprep.subr.bf16.mxu0 %v2147_v25  ;;  %v2133_v13 = vpack.c.bf16 %v877_v10, %v876_v9  ;;  %v927_v25 = vld [vmem:[#allocation3 + $0x488] sm:$0xff]  ;;  %v932_v10 = vld [vmem:[#allocation3 + $0x4b0] sm:$0xff] }
 0x251   : > { %2130 = vmatpush3.bf16.msra.mxu1 %v2129_v2  ;;  %v930_v2 = vld [vmem:[#allocation3 + $0x4a0] sm:$0xff] }
 0x252   : > { %2132 = vmatprep.subr.bf16.mxu1 %v2131_v11  ;;  %v933_v11 = vld [vmem:[#allocation3 + $0x4b8] sm:$0xff] }
 0x253   : > { %2150 = vmatpush3.bf16.msra.mxu0 %v2149_v27  ;;  %v2167_v27 = vpack.c.bf16 %v927_v25, %v926_v22  ;;  %v2179_v14 = vpack.c.bf16 %v933_v11, %v932_v10  ;;  %v938_v25 = vld [vmem:[#allocation3 + $0x4e0] sm:$0xff] }
 0x254   : > { %2152 = vmatprep.subr.bf16.mxu0 %v2151_v42 }
 0x255   : > { %2134 = vmatpush3.bf16.msra.mxu1 %v2133_v13 }
 0x256   : > { %2168 = vmatprep.subr.bf16.mxu1 %v2167_v27 }
 0x257   : > { %2154 = vmatpush3.bf16.msra.mxu0 %v2153_v45 }
 0x258   : > { %2156 = vmatprep.subr.bf16.mxu0 %v2155_v56 }
 0x25b   : > { %2158 = vmatpush3.bf16.msra.mxu0 %v2157_v57 }
 0x25c   : > { %2160 = vmatprep.subr.bf16.mxu0 %v2159_v3  ;;  %v931_v3 = vld [vmem:[#allocation3 + $0x4a8] sm:$0xff] }
 0x25d   : > { %v2175_v8 = vpack.c.bf16 %v931_v3, %v930_v2 }
 0x25f   : > { %2162 = vmatpush3.bf16.msra.mxu0 %v2161_v7 }
 0x260   : > { %2164 = vmatprep.subr.bf16.mxu0 %v2163_v19  ;;  %v2183_v19 = vpack.c.bf16 %v935_v16, %v934_v15 }
 0x263   : > { %2166 = vmatpush3.bf16.msra.mxu0 %v2165_v21  ;;  %v937_v21 = vld [vmem:[#allocation3 + $0x4d8] sm:$0xff] }
 0x264   : > { %2199 = vmatprep.subr.bf16.mxu0 %v2408_v23  ;;  %v2187_v22 = vpack.c.bf16 %v937_v21, %v936_v20 }
 0x319   : > { %v797_v28 = vpop.f32.mrb[6].mxu0 }
 0x31a   : > { %v801_v30 = vmul.f32 0.0625, %v797_v28  ;;  %v1853_v31 = vpop.f32.mrb[7].mxu0 }
 0x31b   : > { %v941_v31 = vld [vmem:[#allocation3 + $0x4f8] sm:$0xff] }
 0x31c   : > { %v803_v33 = vadd.f32 1e-05, %v801_v30  ;;  %v940_v30 = vld [vmem:[#allocation3 + $0x4f0] sm:$0xff] }
 0x31e   : > { %2304 = vrsqrt.f32 %v803_v33  ;;  %v2195_v33 = vpack.c.bf16 %v941_v31, %v940_v30 }
 0x328   : > { %v2305_v36 = vpop.eup %2304 }
 0x329   : > { %v805_v37 = vmul.f32 %v2305_v36, %v802_v34 }
 0x32b   : > { %v810_v39 = vrot.slane %v805_v37, %v2668_v12 }
 0x32d   : > { %v812_v42 = vmul.f32 %v810_v39, %v2671_v17  ;;  %v813_v43 = vmul.f32 %v810_v39, %v2673_v18 }
 0x32f   : > { %v821_v45 = vadd.f32 %v1480_v40, %v812_v42  ;;  %v822_v46 = vadd.f32 %v1480_v40, %v813_v43 }
 0x331   : > { %v823_v47 = vmax.f32 %v821_v45, 0.0  ;;  %v824_v48 = vmax.f32 %v822_v46, 0.0 }
 0x333   : > { %825 = vst [vmem:[#allocation2 + $0x2] sm:$0xff] %v823_v47  ;;  %826 = vst [vmem:[#allocation2 + $0xa] sm:$0xff] %v824_v48 }
 0x33a   : > { %v827_v51 = vld [vmem:[#allocation2] sm:$0xff]  ;;  %v2689_v52 = vld [vmem:[#allocation2 + $0x8] sm:$0xff]  ;;  %v2691_v53 = vld [vmem:[#allocation2 + $0x10] sm:$0xf] }
 0x33b   : > { %v833_v54 = vrot.slane %v827_v51, 1  ;;  %v834_v55 = vrot.slane %v2689_v52, 1  ;;  %v847_v56 = vrot.slane %v827_v51, 3  ;;  %v848_v17 = vrot.slane %v2689_v52, 3 }
 0x33c   : > { %v840_v18 = vrot.slane %v827_v51, 2  ;;  %v841_v57 = vrot.slane %v2689_v52, 2  ;;  %v836_v58 = vrot.slane %v2691_v53, 1  ;;  %v850_v59 = vrot.slane %v2691_v53, 3 }
 0x33d   : > { %v835_v60 = vsel %vm278_vm0, %v833_v54, %v834_v55  ;;  %v849_v61 = vsel %vm294_vm1, %v847_v56, %v848_v17  ;;  %v843_v1 = vrot.slane %v2691_v53, 2  ;;  %v854_v5 = vrot.slane %v827_v51, 4 }
 0x33e   : > { %1014 = vmatprep.mubr.f32.mxu1 %v835_v60  ;;  %1089 = vmatprep.mubr.f32.mxu0 %v849_v61  ;;  %v842_v63 = vsel %vm286_vm2, %v840_v18, %v841_v57  ;;  %v837_v4 = vsel %vm278_vm0, %v834_v55, %v836_v58  ;;  %v855_v6 = vrot.slane %v2689_v52, 4  ;;  %v851_v7 = vsel %vm294_vm1, %v848_v17, %v850_v59 }
 0x33f   : > { %1015 = vmatmul.mubr.f32.vlgmr.msra.gmra.mrb[6].mxu1 %v827_v51  ;;  %1090 = vmatmul.mubr.f32.vlgmr.msra.gmra.mrb[8].mxu0 %v842_v63  ;;  %v844_v9 = vsel %vm286_vm2, %v841_v57, %v843_v1  ;;  %v857_v34 = vrot.slane %v2691_v53, 4 }
 0x340   : > { %2170 = vmatpush3.bf16.msra.mxu1 %v2167_v27  ;;  %1019 = vmatprep.mubr.f32.mxu1 %v837_v4  ;;  %v856_v13 = vsel %vm302_vm3, %v854_v5, %v855_v6  ;;  %v939_v27 = vld [vmem:[#allocation3 + $0x4e8] sm:$0xff] }
 0x341   : > { %1094 = vmatprep.mubr.f32.mxu0 %v851_v7  ;;  %2172 = vmatprep.subr.bf16.mxu1 %v2171_v62  ;;  %v2191_v28 = vpack.c.bf16 %v939_v27, %v938_v25  ;;  %v858_v36 = vsel %vm302_vm3, %v855_v6, %v857_v34 }
 0x342   : > { %2201 = vmatpush3.bf16.msra.mxu0 %v2575_v24 }
 0x343   : > { %1020 = vmatmul.mubr.f32.gmra.mrb[8].mxu1 %v2689_v52  ;;  %1095 = vmatmul.mubr.f32.gmra.mrb[10].mxu0 %v844_v9 }
 0x344   : > { %2174 = vmatpush3.bf16.msra.mxu1 %v2171_v62  ;;  %1886 = vmatprep.mubr.f32.mxu1 %v856_v13  ;;  %v1483_v13 = vld [vmem:[%s2809_s3 + $0x1] sm:$0x1] }
 0x345   : > { %2176 = vmatprep.subr.bf16.mxu1 %v2175_v8  ;;  %2202 = vmatprep.subr.bf16.mxu0 %v2408_v23 }
 0x346   : > { %2204 = vmatpush3.bf16.msra.mxu0 %v2582_v26  ;;  %1921 = vmatprep.mubr.msk.f32.mxu0 %vm2409_vm4, %v2407_v0 }
 0x347   : > { %2205 = vmatprep.subr.bf16.mxu0 %v2408_v23 }
 0x348   : > { %2178 = vmatpush3.bf16.msra.mxu1 %v2175_v8 }
 0x349   : > { %2180 = vmatprep.subr.bf16.mxu1 %v2179_v14 }
 0x34a   : > { %2207 = vmatpush3.bf16.msra.mxu0 %v2594_v29 }
 0x34b   : > { %2208 = vmatprep.subr.bf16.mxu0 %v2408_v23 }
 0x34c   : > { %2182 = vmatpush3.bf16.msra.mxu1 %v2179_v14 }
 0x34d   : > { %2184 = vmatprep.subr.bf16.mxu1 %v2183_v19 }
 0x34e   : > { %2210 = vmatpush3.bf16.msra.mxu0 %v2606_v32 }
 0x34f   : > { %2211 = vmatprep.subr.bf16.mxu0 %v2408_v23 }
 0x350   : > { %2186 = vmatpush3.bf16.msra.mxu1 %v2183_v19  ;;  %v1485_v19 = vld [vmem:[%s2810_s4 + $0x1] ss:$0 sm:$0xff] }
 0x351   : > { %2188 = vmatprep.subr.bf16.mxu1 %v2187_v22 }
 0x352   : > { %2213 = vmatpush3.bf16.msra.mxu0 %v2621_v35 }
 0x353   : > { %2214 = vmatprep.subr.bf16.mxu0 %v2408_v23 }
 0x354   : > { %2190 = vmatpush3.bf16.msra.mxu1 %v2187_v22 }
 0x355   : > { %2192 = vmatprep.subr.bf16.mxu1 %v2191_v28 }
 0x356   : > { %2216 = vmatpush3.bf16.msra.mxu0 %v2633_v38 }
 0x357   : > { %2217 = vmatprep.subr.bf16.mxu0 %v2408_v23 }
 0x358   : > { %2194 = vmatpush3.bf16.msra.mxu1 %v2191_v28 }
 0x359   : > { %2196 = vmatprep.subr.bf16.mxu1 %v2195_v33 }
 0x35a   : > { %2219 = vmatpush3.bf16.msra.mxu0 %v2645_v41 }
 0x35b   : > { %2220 = vmatprep.subr.bf16.mxu0 %v2408_v23 }
 0x35c   : > { %2198 = vmatpush3.bf16.msra.mxu1 %v2195_v33 }
 0x35d   : > { %2223 = vmatprep.subr.bf16.mxu1 %v2408_v23 }
 0x35e   : > { %2222 = vmatpush3.bf16.msra.mxu0 %v2657_v44 }
 0x35f   : > { %1887 = vmatmul.mubr.f32.vlgmr.msra.gmra.mrb[10].mxu1 %v858_v36 }
 0x360   : > { %2225 = vmatpush3.bf16.msra.mxu1 %v2575_v24  ;;  %1956 = vmatprep.mubr.msk.f32.mxu1 %vm2409_vm4, %v2407_v0 }
 0x361   : > { %2226 = vmatprep.subr.bf16.mxu1 %v2408_v23 }
 0x364   : > { %2228 = vmatpush3.bf16.msra.mxu1 %v2582_v26  ;;  %v1482_v26 = vld [vmem:[%s2808_s2 + $0x1] ss:$0 sm:$0xff] }
 0x365   : > { %2229 = vmatprep.subr.bf16.mxu1 %v2408_v23 }
 0x368   : > { %2231 = vmatpush3.bf16.msra.mxu1 %v2594_v29 }
 0x369   : > { %2232 = vmatprep.subr.bf16.mxu1 %v2408_v23 }
 0x36c   : > { %2234 = vmatpush3.bf16.msra.mxu1 %v2606_v32 }
 0x36d   : > { %2235 = vmatprep.subr.bf16.mxu1 %v2408_v23 }
 0x370   : > { %2237 = vmatpush3.bf16.msra.mxu1 %v2621_v35 }
 0x371   : > { %2238 = vmatprep.subr.bf16.mxu1 %v2408_v23 }
 0x374   : > { %2240 = vmatpush3.bf16.msra.mxu1 %v2633_v38 }
 0x375   : > { %2241 = vmatprep.subr.bf16.mxu1 %v2408_v23 }
 0x378   : > { %2243 = vmatpush3.bf16.msra.mxu1 %v2645_v41 }
 0x379   : > { %2244 = vmatprep.subr.bf16.mxu1 %v2408_v23 }
 0x37c   : > { %2246 = vmatpush3.bf16.msra.mxu1 %v2657_v44 }
 0x412   : > { %v1653_v0 = vpop.f32.mrb[6].mxu1  ;;  %v1691_v24 = vpop.f32.mrb[8].mxu0 }
 0x413   : > { %v1654_v29 = vpop.f32.mrb[7].mxu1  ;;  %v1692_v32 = vpop.f32.mrb[9].mxu0 }
 0x414   : > { %v1655_v35 = vadd.f32 %v1654_v29, %v1653_v0  ;;  %v1693_v37 = vadd.f32 %v1692_v32, %v1691_v24 }
 0x416   : > { %v1017_v39 = vadd.f32 %v1655_v35, %v1482_v26  ;;  %v1656_v38 = vpop.f32.mrb[8].mxu1  ;;  %v1694_v40 = vpop.f32.mrb[10].mxu0 }
 0x417   : > { %v1657_v42 = vpop.f32.mrb[9].mxu1  ;;  %v1695_v43 = vpop.f32.mrb[11].mxu0 }
 0x418   : > { %v1658_v41 = vadd.f32 %v1657_v42, %v1656_v38  ;;  %v1696_v45 = vadd.f32 %v1695_v43, %v1694_v40  ;;  %v1092_v23 = vadd.f32 %v1693_v37, %v1017_v39 }
 0x41a   : > { %v1022_v46 = vadd.f32 %v1658_v41, %v1482_v26 }
 0x41c   : > { %v1097_v44 = vadd.f32 %v1696_v45, %v1022_v46 }
 0x432   : > { %v1888_v47 = vpop.f32.mrb[10].mxu1 }
 0x433   : > { %v1172_v48 = vadd.f32 %v1888_v47, %v1097_v44  ;;  %v1166_v49 = vpop.f32.mrb[11].mxu1 }
 0x434   : > { %v1167_v50 = vadd.f32 %v1166_v49, %v1092_v23 }
 0x436   : > { %v1175_v51 = vadd.f32 %v1172_v48, %v1167_v50 }
 0x438   : > { %v1176_v52 = vrot.slane %v1175_v51, 4 }
 0x43a   : > { %v1177_v53 = vadd.f32 %v1176_v52, %v1175_v51 }
 0x43c   : > { %v1178_v54 = vrot.slane %v1177_v53, 2 }
 0x43e   : > { %v1179_v55 = vadd.f32 %v1178_v54, %v1177_v53 }
 0x440   : > { %v1180_v56 = vrot.slane %v1179_v55, 1 }
 0x442   : > { %v1181_v17 = vadd.f32 %v1180_v56, %v1179_v55 }
 0x444   : > { %1922 = vmatmul.mubr.f32.vlgmr.msra.gmra.mrb[12].mxu0 %v1181_v17 }
 0x517   : > { %v1264_v18 = vpop.f32.mrb[12].mxu0 }
 0x518   : > { %v1268_v57 = vmul.f32 0.0625, %v1264_v18  ;;  %v1923_v58 = vpop.f32.mrb[13].mxu0 }
 0x51a   : > { %v1272_v59 = vrot.slane %v1268_v57, %v2668_v12 }
 0x51c   : > { %v1273_v60 = vsub.f32 %v1167_v50, %v1272_v59  ;;  %v1274_v61 = vsub.f32 %v1172_v48, %v1272_v59 }
 0x51e   : > { %v1275_v62 = vmul.f32 %v1273_v60, %v1273_v60  ;;  %v1276_v63 = vmul.f32 %v1274_v61, %v1274_v61 }
 0x520   : > { %v1277_v1 = vadd.f32 %v1276_v63, %v1275_v62 }
 0x522   : > { %v1278_v2 = vrot.slane %v1277_v1, 4 }
 0x524   : > { %v1279_v3 = vadd.f32 %v1278_v2, %v1277_v1 }
 0x526   : > { %v1280_v4 = vrot.slane %v1279_v3, 2 }
 0x528   : > { %v1281_v5 = vadd.f32 %v1280_v4, %v1279_v3 }
 0x52a   : > { %v1282_v6 = vrot.slane %v1281_v5, 1 }
 0x52c   : > { %v1283_v7 = vadd.f32 %v1282_v6, %v1281_v5 }
 0x52e   : > { %1957 = vmatmul.mubr.f32.vlgmr.msra.gmra.mrb[12].mxu1 %v1283_v7 }
 0x601   : > { %v1350_v8 = vpop.f32.mrb[12].mxu1 }
 0x602   : > { %v1354_v9 = vmul.f32 0.0625, %v1350_v8  ;;  %v1958_v10 = vpop.f32.mrb[13].mxu1 }
 0x604   : > { %v1357_v11 = vadd.f32 1e-05, %v1354_v9 }
 0x606   : > { %2306 = vrsqrt.f32 %v1357_v11 }
 0x610   : > { %v2307_v14 = vpop.eup %2306 }
 0x611   : > { %v1359_v15 = vmul.f32 %v2307_v14, %v1483_v13 }
 0x613   : > { %v1364_v16 = vrot.slane %v1359_v15, %v2668_v12 }
 0x615   : > { %v1366_v20 = vmul.f32 %v1364_v16, %v1273_v60  ;;  %v1367_v21 = vmul.f32 %v1364_v16, %v1274_v61 }
 0x617   : > { %v1376_v22 = vadd.f32 %v1485_v19, %v1366_v20  ;;  %v1377_v25 = vadd.f32 %v1485_v19, %v1367_v21 }
 0x619   : > { %v1378_v12 = vmax.f32 %v1376_v22, 0.0  ;;  %v1379_v27 = vmax.f32 %v1377_v25, 0.0 }
 0x61b   : > { %1380 = vst [vmem:[%s259_s17] sm:$0xff] %v1378_v12  ;;  %1381 = vst [vmem:[%s259_s17 + $0x8] sm:$0xff] %v1379_v27 }
 0x61c   : > { %2349 = shalt.err (!%p2346_p7)
}
 0x61d   : > { %s2350_s9 = scalar_lea.hbm %s2761_s26, 256  ;;  %s2354_s14 = scalar_lea.hbm %s2812_s6, 512 }
 0x61e   : > { %p2351_p8 = scmp.ne.s32.totalorder %s2761_s26, %s2350_s9  ;;  %p2355_p1 = scmp.lt.u32.totalorder %s2761_s26, %s2812_s6 }
 0x61f   : > { %p2356_p0 = scmp.lt.u32.totalorder %s2354_s14, %s2350_s9  ;;  %p2358_p6 = scmp.lt.u32.totalorder %s2350_s9, %s2761_s26 }
 0x620   : > { %p2352_p11 = pnand %p2351_p8, %p2823_p9 }
 0x621   : > { %p2357_p5 = por %p2356_p0, %p2355_p1 }
 0x622   : > { %p2353_p13 = pneg %p2352_p11 }
 0x623   : > { %p2359_p10 = por %p2358_p6, %p2357_p5 }
 0x625   : > { %p2360_p12 = pnand %p2359_p10, %p2353_p13 }
 0x627   : > { %2363 = shalt.err (!%p2360_p12)
}
 0x628   : > { %s2411_s17 = smov 128   ;;  %s2412_s19 = smov 8  }
 0x629   : > { %2251 = dma.vmem_to_hbm [thread:$0]  (%p2823_p9), %s2763_s18, 256, %s2761_s26, %s2765_s28, %s2411_s17, %s2411_s17, %s2412_s19  }
 0x62a PF: > { %p2263_p2 = scmp.ge.s32.totalorder %s2402_s24, 2  ;;  %s1411_s20 = sand.u32 1, %s2390_s21  }
 0x62b   : > { %p2824_p3 = scmp.ne.s32.totalorder %s2817_s8, 0  ;;  %s1412_s25 = scalar_lea.sflag [#allocation5], %s1411_s20 }
 0x62d   : > { %p2258_p4 = pnand %p2263_p2, %p2824_p3 }
 0x62f   : > { %2385 = dma.done.wait (!%p2258_p4), %s1412_s25, 256  }
 0x630   : > { %2387 = vsyncadd (!%p2258_p4), %s1412_s25, 4294967040  ;;  %p17_p7 = scmp.ge.s32.totalorder %s2473_s27, 4   ;;  %s2825_s21 = smov %s2394_s22 }
 0x631   : > { %s2826_s22 = smov %s2398_s23  ;;  %s2827_s23 = smov %s2484_s30 }
 0x632   : > { %s2828_s24 = smov %s2473_s27  ;;  %19 = sbr.rel (!%p17_p7) target bundleno = 4 (0x4), region = 88 }
 0x639   :  { %1417 = vsyncpa [#allocation4], 1 }
 0x63a   :  { %1419 = vsyncpa [#allocation4 + $0x1], 1 }
 0x63b   :  { %1420 = vsyncpa [#allocation5], 1 }
 0x63c   :  { %1422 = vsyncpa [#allocation5 + $0x1], 1 }

</bundles_post_ra>
